<compile_context>
chip_gen: v5e
topology: v5e:2x2
jax: 0.10.0
libtpu: 0.0.40
codegen_flags: <defaults>
</compile_context>

<pallas_src>
import jax
import jax.numpy as jnp
from jax.experimental import pallas as pl
from jax.experimental.pallas import tpu as pltpu

# ---------------- static config ----------------
N_NODES   = 16
IN_FEAT   = 64            # Model hardcodes nn.Linear(64, n_hid)
N_HID     = 32
ATTN_DIM  = 64
N_ADJS    = 4
N_STEPS   = [2, 3]
CSTR      = [0, 1]
N_METAS   = len(N_STEPS)
LN_EPS    = 1e-5
INV_SQRT2 = 0.7071067811865476
LANES     = 128

# ---- parameter-slab row layout (all section starts are multiples of 8) ----
ROW_WPROJ = 0                        # (2*IN_FEAT, N_HID)  block-diag projection W
ROW_BPROJ = ROW_WPROJ + 2 * IN_FEAT  # (N_NODES, N_HID)    per-node projection bias
ROW_CW    = ROW_BPROJ + N_NODES      # (N_HID, N_METAS*N_HID) fused cell-affine W
ROW_CB    = ROW_CW + N_HID           # 1 row: fused cell-affine bias
ROW_A1W   = ROW_CB + 8               # (N_HID, ATTN_DIM)   attn_fc1 W
ROW_A1B   = ROW_A1W + N_HID          # 1 row: attn_fc1 bias
ROW_A2W   = ROW_A1B + 8              # 1 row: attn_fc2 weight as a row vector
P_ROWS    = ROW_A2W + 8

# ---- activation-slab row layout ----
ROW_FEATS  = 0          # (N_NODES, 128) block-diag node features
ROW_GROUPS = N_NODES    # then N_NODES rows per adjacency group


# ======================= static architecture plan =======================

def build_plan(n_steps, cstr, n_adjs, idxes_seq, idxes_res):
    """Per-meta list of groups; each group is a list of terms
    (adj_index, state_index, softmax_table, row, col).  Each group is realised
    as ONE K-concatenated matmul in the kernel."""
    plan = []
    for m, n_step in enumerate(n_steps):
        groups = []
        offset = 0
        for i in range(n_step - 1):
            col = int(idxes_seq[m][0][i])
            terms = [(col, i, 'seq0', i, col)]
            for j in range(i):
                c = int(idxes_res[m][0][offset + j])
                terms.append((c, j, 'res0', offset + j, c))
            offset += i
            groups.append(terms)
        cstr_map = list(cstr) + [n_adjs - 1]
        c = int(idxes_seq[m][1])
        terms = [(int(cstr[c]), n_step - 1, 'seq1', None, c)]
        for i in range(n_step - 1):
            c = int(idxes_res[m][1][i])
            terms.append((int(cstr_map[c]), i, 'res1', i, c))
        groups.append(terms)
        plan.append(groups)
    return plan


def n_arch_scalars(plan):
    return sum(len(terms) for groups in plan for terms in groups)


# ======================= one-time input packing =======================

def pack_scalars(params, plan):
    """Architecture softmax scalars (kernel consumption order) + attn_fc2 bias."""
    vals = []
    for m, groups in enumerate(plan):
        soft = {
            'seq0': None if params['as_seq'][m] is None
                    else jax.nn.softmax(params['as_seq'][m], axis=-1),
            'seq1': jax.nn.softmax(params['as_last_seq'][m], axis=-1),
            'res0': None if params['as_res'][m] is None
                    else jax.nn.softmax(params['as_res'][m], axis=-1),
            'res1': None if params['as_last_res'][m] is None
                    else jax.nn.softmax(params['as_last_res'][m], axis=-1),
        }
        for terms in groups:
            for (_adj, _st, table, row, col) in terms:
                t = soft[table]
                vals.append(t[col] if row is None else t[row, col])
    vals.append(params['attn_fc2']['b'][0])
    return jnp.stack([jnp.asarray(v, jnp.float32) for v in vals])


def pack_param_slab(params):
    P = jnp.zeros((P_ROWS, LANES), jnp.float32)
    # block-diagonal projection weight: rows [0,64)=type-0 W, [64,128)=type-1 W
    P = P.at[ROW_WPROJ:ROW_WPROJ + IN_FEAT, 0:N_HID].set(params['ws'][0]['W'])
    P = P.at[ROW_WPROJ + IN_FEAT:ROW_WPROJ + 2 * IN_FEAT, 0:N_HID].set(params['ws'][1]['W'])
    # per-node projection bias (first 8 nodes are type 0, last 8 are type 1)
    P = P.at[ROW_BPROJ:ROW_BPROJ + 8, 0:N_HID].set(
        jnp.broadcast_to(params['ws'][0]['b'], (8, N_HID)))
    P = P.at[ROW_BPROJ + 8:ROW_BPROJ + 16, 0:N_HID].set(
        jnp.broadcast_to(params['ws'][1]['b'], (8, N_HID)))
    # both cell affines fused along lanes
    for m in range(N_METAS):
        P = P.at[ROW_CW:ROW_CW + N_HID, m * N_HID:(m + 1) * N_HID].set(params['cells'][m]['W'])
        P = P.at[ROW_CB, m * N_HID:(m + 1) * N_HID].set(params['cells'][m]['b'])
    # attention scorer
    P = P.at[ROW_A1W:ROW_A1W + N_HID, 0:ATTN_DIM].set(params['attn_fc1']['W'])
    P = P.at[ROW_A1B, 0:ATTN_DIM].set(params['attn_fc1']['b'])
    P = P.at[ROW_A2W, 0:ATTN_DIM].set(params['attn_fc2']['W'][:, 0])
    return P


def pack_act_slab(node_feats, adjs, plan):
    n_groups = sum(len(groups) for groups in plan)
    X = jnp.zeros((ROW_GROUPS + N_NODES * n_groups, LANES), jnp.float32)
    # block-diag features: type-0 nodes in lanes [0,64), type-1 in [64,128)
    X = X.at[0:8, 0:IN_FEAT].set(node_feats[0])
    X = X.at[8:16, IN_FEAT:2 * IN_FEAT].set(node_feats[1])
    r = ROW_GROUPS
    for groups in plan:
        for terms in groups:
            for t_i, term in enumerate(terms):
                adj = term[0]
                X = X.at[r:r + N_NODES, t_i * N_NODES:(t_i + 1) * N_NODES].set(adjs[adj])
            r += N_NODES
    return X


# ======================= fused kernel =======================

def _erf_poly(x):
    # Abramowitz & Stegun 7.1.26, |err| < 1.5e-7 (f32 machine precision).
    a1, a2, a3, a4, a5 = (0.254829592, -0.284496736, 1.421413741,
                          -1.453152027, 1.061405429)
    p = 0.3275911
    ax = jnp.abs(x)
    t = 1.0 / (1.0 + p * ax)
    poly = ((((a5 * t + a4) * t + a3) * t + a2) * t + a1) * t
    y = 1.0 - poly * jnp.exp(-ax * ax)
    return jnp.where(x >= 0.0, y, -y)


def make_fused_kernel(plan, use_native_erf):
    n_sc = n_arch_scalars(plan)

    def erf(v):
        return jax.lax.erf(v) if use_native_erf else _erf_poly(v)

    def kernel(sc_ref, p_ref, x_ref, o_ref):
        # --- fused node-feature projection: one (16,128)@(128,32) matmul ---
        feats = x_ref[ROW_FEATS:ROW_FEATS + N_NODES, :]
        wproj = p_ref[ROW_WPROJ:ROW_WPROJ + 2 * IN_FEAT, 0:N_HID]
        bproj = p_ref[ROW_BPROJ:ROW_BPROJ + N_NODES, 0:N_HID]
        hid = jnp.dot(feats, wproj, preferred_element_type=jnp.float32) + bproj

        # --- both cell affines in one matmul: (16,32)@(32,64) ---
        cw = p_ref[ROW_CW:ROW_CW + N_HID, 0:N_METAS * N_HID]
        cb = p_ref[ROW_CB:ROW_CB + 1, 0:N_METAS * N_HID]
        aff = jnp.dot(hid, cw, preferred_element_type=jnp.float32) + cb

        sc_pos = [0]                       # trace-time scalar cursor

        def next_scalar():
            v = sc_ref[sc_pos[0]]
            sc_pos[0] += 1
            return v

        hids = []
        g_row = ROW_GROUPS
        for m, groups in enumerate(plan):
            states = [aff[:, m * N_HID:(m + 1) * N_HID]]
            out = None
            for gi, terms in enumerate(groups):
                k = len(terms)
                # pre-concatenated [A_a | A_b | ...] block from the slab
                Ag = x_ref[g_row:g_row + N_NODES, 0:k * N_NODES]
                g_row += N_NODES
                # scale the states (pre-dot) and let the MXU do the K-sum
                scaled = [next_scalar() * states[term[1]] for term in terms]
                rhs = scaled[0] if k == 1 else jnp.concatenate(scaled, axis=0)
                acc = jnp.dot(Ag, rhs, preferred_element_type=jnp.float32)
                if gi + 1 < len(groups):
                    states.append(acc)
                else:
                    out = acc
            # LayerNorm(elementwise_affine=False) + exact GELU
            mean = jnp.mean(out, axis=-1, keepdims=True)
            var = jnp.mean(jnp.square(out - mean), axis=-1, keepdims=True)
            out = (out - mean) * jax.lax.rsqrt(var + LN_EPS)
            out = 0.5 * out * (1.0 + erf(out * INV_SQRT2))
            hids.append(out)

        # --- attention scorer, batched over metas (one fc1 matmul) ---
        H = hids[0] if N_METAS == 1 else jnp.concatenate(hids, axis=0)
        a1w = p_ref[ROW_A1W:ROW_A1W + N_HID, 0:ATTN_DIM]
        a1b = p_ref[ROW_A1B:ROW_A1B + 1, 0:ATTN_DIM]
        t = jnp.tanh(jnp.dot(H, a1w, preferred_element_type=jnp.float32) + a1b)
        # attn_fc2 (N=1): VPU mul + lane reduction instead of an MXU matmul
        a2w = p_ref[ROW_A2W:ROW_A2W + 1, 0:ATTN_DIM]
        a2b = sc_ref[n_sc]
        logits = jnp.sum(t * a2w, axis=-1, keepdims=True) + a2b    # (M*16, 1)

        # softmax over metas + attention-weighted sum (all in vregs)
        logit = [logits[m * N_NODES:(m + 1) * N_NODES, :] for m in range(N_METAS)]
        lmax = logit[0]
        for mm in range(1, N_METAS):
            lmax = jnp.maximum(lmax, logit[mm])
        exps = [jnp.exp(l - lmax) for l in logit]
        denom = exps[0]
        for mm in range(1, N_METAS):
            denom = denom + exps[mm]
        inv = 1.0 / denom
        acc_out = (exps[0] * inv) * hids[0]
        for mm in range(1, N_METAS):
            acc_out = acc_out + (exps[mm] * inv) * hids[mm]
        o_ref[...] = acc_out

    return kernel


def make_forward(plan, use_native_erf=True):
    kernel = make_fused_kernel(plan, use_native_erf)
    vmem = pl.BlockSpec(memory_space=pltpu.MemorySpace.VMEM)
    call = pl.pallas_call(
        kernel,
        out_shape=jax.ShapeDtypeStruct((N_NODES, N_HID), jnp.float32),
        in_specs=[pl.BlockSpec(memory_space=pltpu.MemorySpace.SMEM), vmem, vmem],
        out_specs=vmem,
    )
    return jax.jit(call)


# ======================= deterministic parameter init =======================

def init_params(key):
    keys = iter(jax.random.split(key, 64))

    def lin(kin, kout):
        W = 0.1 * jax.random.normal(next(keys), (kin, kout), jnp.float32)
        b = 0.1 * jax.random.normal(next(keys), (kout,), jnp.float32)
        return {'W': W, 'b': b}

    params = {
        'ws': [lin(IN_FEAT, N_HID) for _ in range(2)],
        'cells': [lin(N_HID, N_HID) for _ in N_STEPS],
        'attn_fc1': lin(N_HID, ATTN_DIM),
        'attn_fc2': lin(ATTN_DIM, 1),
        'as_seq': [], 'as_last_seq': [], 'as_res': [], 'as_last_res': [],
    }
    for s in N_STEPS:
        params['as_seq'].append(
            0.001 * jax.random.normal(next(keys), (s - 1, N_ADJS - 1), jnp.float32)
            if s > 1 else None)
        params['as_last_seq'].append(
            0.001 * jax.random.normal(next(keys), (len(CSTR),), jnp.float32))
        k = sum(1 for i in range(2, s) for _ in range(i - 1))
        params['as_res'].append(
            0.001 * jax.random.normal(next(keys), (k, N_ADJS), jnp.float32)
            if k > 0 else None)
        params['as_last_res'].append(
            0.001 * jax.random.normal(next(keys), (s - 1, len(CSTR) + 1), jnp.float32)
            if s > 1 else None)
    return params


# ======================= main =======================

if __name__ == "__main__":
    key = jax.random.PRNGKey(0)
    kp, kf0, kf1, ka = jax.random.split(key, 4)
    params = init_params(kp)

    # two node types: first 8 nodes are type 0, last 8 are type 1
    node_feats = [jax.random.normal(kf0, (8, IN_FEAT), jnp.float32),
                  jax.random.normal(kf1, (8, IN_FEAT), jnp.float32)]

    # dense row-normalised adjacency matrices (stand-in for sparse torch.spmm adjs)
    adjs = []
    for kj in jax.random.split(ka, N_ADJS):
        A = (jax.random.uniform(kj, (N_NODES, N_NODES)) > 0.5).astype(jnp.float32)
        A = A / jnp.maximum(A.sum(-1, keepdims=True), 1.0)
        adjs.append(A)

    # fixed (deterministic) architecture choices, matching Model.sample() shapes
    idxes_seq = [[[0], 1],            # meta 0: n_step=2
                 [[1, 2], 0]]         # meta 1: n_step=3
    idxes_res = [[None, [2]],         # meta 0
                 [[3], [0, 2]]]       # meta 1

    plan = build_plan(N_STEPS, CSTR, N_ADJS, idxes_seq, idxes_res)

    # one-time setup: pack everything into two slabs + one SMEM scalar vector
    scalars = pack_scalars(params, plan)
    p_slab = pack_param_slab(params)
    x_slab = pack_act_slab(node_feats, adjs, plan)

    try:
        fwd = make_forward(plan, use_native_erf=True)
        out = jax.block_until_ready(fwd(scalars, p_slab, x_slab))
    except Exception:
        # TODO(synk): lax.erf may not lower inside Mosaic on some JAX builds;
        # fall back to an in-kernel A&S 7.1.26 erf polynomial (|err|<1.5e-7,
        # f32-exact) — NOT the tanh GELU approximation.
        fwd = make_forward(plan, use_native_erf=False)
        out = jax.block_until_ready(fwd(scalars, p_slab, x_slab))

    assert out.shape == (N_NODES, N_HID) and out.dtype == jnp.float32
    assert bool(jnp.all(jnp.isfinite(out)))
    print("KERNEL_OK")
</pallas_src>

<mosaic_0001>
module attributes {stable_mosaic.version = 11 : i64} {
  func.func @kernel(%arg0: memref<10xf32, #tpu.memory_space<smem>>, %arg1: memref<232x128xf32, #tpu.memory_space<vmem>>, %arg2: memref<96x128xf32, #tpu.memory_space<vmem>>, %arg3: memref<16x32xf32, #tpu.memory_space<vmem>>) attributes {dimension_semantics = [], scalar_prefetch = 0 : i64, scratch_operands = 0 : i64, tpu.core_type = #tpu.core_type<tc>} {
    %c0 = arith.constant 0 : index
    %c0_0 = arith.constant 0 : index
    %0 = vector.load %arg2[%c0, %c0_0] : memref<96x128xf32, #tpu.memory_space<vmem>>, vector<16x128xf32>
    %c0_1 = arith.constant 0 : index
    %c0_2 = arith.constant 0 : index
    %1 = vector.load %arg1[%c0_1, %c0_2] : memref<232x128xf32, #tpu.memory_space<vmem>>, vector<128x32xf32>
    %c128 = arith.constant 128 : index
    %c0_3 = arith.constant 0 : index
    %2 = vector.load %arg1[%c128, %c0_3] : memref<232x128xf32, #tpu.memory_space<vmem>>, vector<16x32xf32>
    %cst = arith.constant dense<0.000000e+00> : vector<16x32xf32>
    %3 = tpu.matmul %0, %1, %cst {dimension_numbers = #tpu.dot_dimension_numbers<[1], [0], [0], [1], [0, 0, 1, 1], [], []>} : vector<16x128xf32>, vector<128x32xf32>, vector<16x32xf32> -> vector<16x32xf32>
    %4 = arith.addf %3, %2 : vector<16x32xf32>
    %c144 = arith.constant 144 : index
    %c0_4 = arith.constant 0 : index
    %5 = vector.load %arg1[%c144, %c0_4] : memref<232x128xf32, #tpu.memory_space<vmem>>, vector<32x64xf32>
    %c176 = arith.constant 176 : index
    %c0_5 = arith.constant 0 : index
    %6 = vector.load %arg1[%c176, %c0_5] : memref<232x128xf32, #tpu.memory_space<vmem>>, vector<1x64xf32>
    %cst_6 = arith.constant dense<0.000000e+00> : vector<16x64xf32>
    %7 = tpu.matmul %4, %5, %cst_6 {dimension_numbers = #tpu.dot_dimension_numbers<[1], [0], [0], [1], [0, 0, 1, 1], [], []>} : vector<16x32xf32>, vector<32x64xf32>, vector<16x64xf32> -> vector<16x64xf32>
    %8 = vector.broadcast %6 : vector<1x64xf32> to vector<16x64xf32>
    %9 = arith.addf %7, %8 : vector<16x64xf32>
    %10 = vector.extract_strided_slice %9 {offsets = [0, 0], sizes = [16, 32], strides = [1, 1]} : vector<16x64xf32> to vector<16x32xf32>
    %c16 = arith.constant 16 : index
    %c0_7 = arith.constant 0 : index
    %11 = vector.load %arg2[%c16, %c0_7] : memref<96x128xf32, #tpu.memory_space<vmem>>, vector<16x16xf32>
    %c0_8 = arith.constant 0 : index
    %12 = memref.load %arg0[%c0_8] : memref<10xf32, #tpu.memory_space<smem>>
    %13 = vector.broadcast %12 : f32 to vector<16x32xf32>
    %14 = arith.mulf %13, %10 : vector<16x32xf32>
    %cst_9 = arith.constant dense<0.000000e+00> : vector<16x32xf32>
    %15 = tpu.matmul %11, %14, %cst_9 {dimension_numbers = #tpu.dot_dimension_numbers<[1], [0], [0], [1], [0, 0, 1, 1], [], []>} : vector<16x16xf32>, vector<16x32xf32>, vector<16x32xf32> -> vector<16x32xf32>
    %c32 = arith.constant 32 : index
    %c0_10 = arith.constant 0 : index
    %16 = vector.load %arg2[%c32, %c0_10] : memref<96x128xf32, #tpu.memory_space<vmem>>, vector<16x32xf32>
    %c1 = arith.constant 1 : index
    %17 = memref.load %arg0[%c1] : memref<10xf32, #tpu.memory_space<smem>>
    %18 = vector.broadcast %17 : f32 to vector<16x32xf32>
    %19 = arith.mulf %18, %15 : vector<16x32xf32>
    %c2 = arith.constant 2 : index
    %20 = memref.load %arg0[%c2] : memref<10xf32, #tpu.memory_space<smem>>
    %21 = vector.broadcast %20 : f32 to vector<16x32xf32>
    %22 = arith.mulf %21, %10 : vector<16x32xf32>
    %23 = tpu.concatenate %19, %22 in 0 : vector<16x32xf32>, vector<16x32xf32> -> vector<32x32xf32>
    %cst_11 = arith.constant dense<0.000000e+00> : vector<16x32xf32>
    %24 = tpu.matmul %16, %23, %cst_11 {dimension_numbers = #tpu.dot_dimension_numbers<[1], [0], [0], [1], [0, 0, 1, 1], [], []>} : vector<16x32xf32>, vector<32x32xf32>, vector<16x32xf32> -> vector<16x32xf32>
    %cst_12 = arith.constant dense<0.000000e+00> : vector<16xf32>
    %25 = vector.multi_reduction <add>, %24, %cst_12 [1] : vector<16x32xf32> to vector<16xf32>
    %26 = vector.shape_cast %25 : vector<16xf32> to vector<16x1xf32>
    %cst_13 = arith.constant 3.200000e+01 : f32
    %27 = vector.broadcast %cst_13 : f32 to vector<16x1xf32>
    %28 = arith.divf %26, %27 : vector<16x1xf32>
    %29 = vector.broadcast %28 : vector<16x1xf32> to vector<16x32xf32>
    %30 = arith.subf %24, %29 : vector<16x32xf32>
    %31 = arith.mulf %30, %30 : vector<16x32xf32>
    %cst_14 = arith.constant dense<0.000000e+00> : vector<16xf32>
    %32 = vector.multi_reduction <add>, %31, %cst_14 [1] : vector<16x32xf32> to vector<16xf32>
    %33 = vector.shape_cast %32 : vector<16xf32> to vector<16x1xf32>
    %cst_15 = arith.constant 3.200000e+01 : f32
    %34 = vector.broadcast %cst_15 : f32 to vector<16x1xf32>
    %35 = arith.divf %33, %34 : vector<16x1xf32>
    %36 = vector.broadcast %28 : vector<16x1xf32> to vector<16x32xf32>
    %37 = arith.subf %24, %36 : vector<16x32xf32>
    %cst_16 = arith.constant 9.99999974E-6 : f32
    %38 = vector.broadcast %cst_16 : f32 to vector<16x1xf32>
    %39 = arith.addf %35, %38 : vector<16x1xf32>
    %40 = math.rsqrt %39 : vector<16x1xf32>
    %41 = vector.broadcast %40 : vector<16x1xf32> to vector<16x32xf32>
    %42 = arith.mulf %37, %41 : vector<16x32xf32>
    %cst_17 = arith.constant 5.000000e-01 : f32
    %43 = vector.broadcast %cst_17 : f32 to vector<16x32xf32>
    %44 = arith.mulf %43, %42 : vector<16x32xf32>
    %cst_18 = arith.constant 0.707106769 : f32
    %45 = vector.broadcast %cst_18 : f32 to vector<16x32xf32>
    %46 = arith.mulf %42, %45 : vector<16x32xf32>
    %47 = math.erf %46 : vector<16x32xf32>
    %cst_19 = arith.constant 1.000000e+00 : f32
    %48 = vector.broadcast %cst_19 : f32 to vector<16x32xf32>
    %49 = arith.addf %48, %47 : vector<16x32xf32>
    %50 = arith.mulf %44, %49 : vector<16x32xf32>
    %51 = vector.extract_strided_slice %9 {offsets = [0, 32], sizes = [16, 32], strides = [1, 1]} : vector<16x64xf32> to vector<16x32xf32>
    %c48 = arith.constant 48 : index
    %c0_20 = arith.constant 0 : index
    %52 = vector.load %arg2[%c48, %c0_20] : memref<96x128xf32, #tpu.memory_space<vmem>>, vector<16x16xf32>
    %c3 = arith.constant 3 : index
    %53 = memref.load %arg0[%c3] : memref<10xf32, #tpu.memory_space<smem>>
    %54 = vector.broadcast %53 : f32 to vector<16x32xf32>
    %55 = arith.mulf %54, %51 : vector<16x32xf32>
    %cst_21 = arith.constant dense<0.000000e+00> : vector<16x32xf32>
    %56 = tpu.matmul %52, %55, %cst_21 {dimension_numbers = #tpu.dot_dimension_numbers<[1], [0], [0], [1], [0, 0, 1, 1], [], []>} : vector<16x16xf32>, vector<16x32xf32>, vector<16x32xf32> -> vector<16x32xf32>
    %c64 = arith.constant 64 : index
    %c0_22 = arith.constant 0 : index
    %57 = vector.load %arg2[%c64, %c0_22] : memref<96x128xf32, #tpu.memory_space<vmem>>, vector<16x32xf32>
    %c4 = arith.constant 4 : index
    %58 = memref.load %arg0[%c4] : memref<10xf32, #tpu.memory_space<smem>>
    %59 = vector.broadcast %58 : f32 to vector<16x32xf32>
    %60 = arith.mulf %59, %56 : vector<16x32xf32>
    %c5 = arith.constant 5 : index
    %61 = memref.load %arg0[%c5] : memref<10xf32, #tpu.memory_space<smem>>
    %62 = vector.broadcast %61 : f32 to vector<16x32xf32>
    %63 = arith.mulf %62, %51 : vector<16x32xf32>
    %64 = tpu.concatenate %60, %63 in 0 : vector<16x32xf32>, vector<16x32xf32> -> vector<32x32xf32>
    %cst_23 = arith.constant dense<0.000000e+00> : vector<16x32xf32>
    %65 = tpu.matmul %57, %64, %cst_23 {dimension_numbers = #tpu.dot_dimension_numbers<[1], [0], [0], [1], [0, 0, 1, 1], [], []>} : vector<16x32xf32>, vector<32x32xf32>, vector<16x32xf32> -> vector<16x32xf32>
    %c80 = arith.constant 80 : index
    %c0_24 = arith.constant 0 : index
    %66 = vector.load %arg2[%c80, %c0_24] : memref<96x128xf32, #tpu.memory_space<vmem>>, vector<16x48xf32>
    %c6 = arith.constant 6 : index
    %67 = memref.load %arg0[%c6] : memref<10xf32, #tpu.memory_space<smem>>
    %68 = vector.broadcast %67 : f32 to vector<16x32xf32>
    %69 = arith.mulf %68, %65 : vector<16x32xf32>
    %c7 = arith.constant 7 : index
    %70 = memref.load %arg0[%c7] : memref<10xf32, #tpu.memory_space<smem>>
    %71 = vector.broadcast %70 : f32 to vector<16x32xf32>
    %72 = arith.mulf %71, %51 : vector<16x32xf32>
    %c8 = arith.constant 8 : index
    %73 = memref.load %arg0[%c8] : memref<10xf32, #tpu.memory_space<smem>>
    %74 = vector.broadcast %73 : f32 to vector<16x32xf32>
    %75 = arith.mulf %74, %56 : vector<16x32xf32>
    %76 = tpu.concatenate %69, %72, %75 in 0 : vector<16x32xf32>, vector<16x32xf32>, vector<16x32xf32> -> vector<48x32xf32>
    %cst_25 = arith.constant dense<0.000000e+00> : vector<16x32xf32>
    %77 = tpu.matmul %66, %76, %cst_25 {dimension_numbers = #tpu.dot_dimension_numbers<[1], [0], [0], [1], [0, 0, 1, 1], [], []>} : vector<16x48xf32>, vector<48x32xf32>, vector<16x32xf32> -> vector<16x32xf32>
    %cst_26 = arith.constant dense<0.000000e+00> : vector<16xf32>
    %78 = vector.multi_reduction <add>, %77, %cst_26 [1] : vector<16x32xf32> to vector<16xf32>
    %79 = vector.shape_cast %78 : vector<16xf32> to vector<16x1xf32>
    %cst_27 = arith.constant 3.200000e+01 : f32
    %80 = vector.broadcast %cst_27 : f32 to vector<16x1xf32>
    %81 = arith.divf %79, %80 : vector<16x1xf32>
    %82 = vector.broadcast %81 : vector<16x1xf32> to vector<16x32xf32>
    %83 = arith.subf %77, %82 : vector<16x32xf32>
    %84 = arith.mulf %83, %83 : vector<16x32xf32>
    %cst_28 = arith.constant dense<0.000000e+00> : vector<16xf32>
    %85 = vector.multi_reduction <add>, %84, %cst_28 [1] : vector<16x32xf32> to vector<16xf32>
    %86 = vector.shape_cast %85 : vector<16xf32> to vector<16x1xf32>
    %cst_29 = arith.constant 3.200000e+01 : f32
    %87 = vector.broadcast %cst_29 : f32 to vector<16x1xf32>
    %88 = arith.divf %86, %87 : vector<16x1xf32>
    %89 = vector.broadcast %81 : vector<16x1xf32> to vector<16x32xf32>
    %90 = arith.subf %77, %89 : vector<16x32xf32>
    %cst_30 = arith.constant 9.99999974E-6 : f32
    %91 = vector.broadcast %cst_30 : f32 to vector<16x1xf32>
    %92 = arith.addf %88, %91 : vector<16x1xf32>
    %93 = math.rsqrt %92 : vector<16x1xf32>
    %94 = vector.broadcast %93 : vector<16x1xf32> to vector<16x32xf32>
    %95 = arith.mulf %90, %94 : vector<16x32xf32>
    %cst_31 = arith.constant 5.000000e-01 : f32
    %96 = vector.broadcast %cst_31 : f32 to vector<16x32xf32>
    %97 = arith.mulf %96, %95 : vector<16x32xf32>
    %cst_32 = arith.constant 0.707106769 : f32
    %98 = vector.broadcast %cst_32 : f32 to vector<16x32xf32>
    %99 = arith.mulf %95, %98 : vector<16x32xf32>
    %100 = math.erf %99 : vector<16x32xf32>
    %cst_33 = arith.constant 1.000000e+00 : f32
    %101 = vector.broadcast %cst_33 : f32 to vector<16x32xf32>
    %102 = arith.addf %101, %100 : vector<16x32xf32>
    %103 = arith.mulf %97, %102 : vector<16x32xf32>
    %104 = tpu.concatenate %50, %103 in 0 : vector<16x32xf32>, vector<16x32xf32> -> vector<32x32xf32>
    %c184 = arith.constant 184 : index
    %c0_34 = arith.constant 0 : index
    %105 = vector.load %arg1[%c184, %c0_34] : memref<232x128xf32, #tpu.memory_space<vmem>>, vector<32x64xf32>
    %c216 = arith.constant 216 : index
    %c0_35 = arith.constant 0 : index
    %106 = vector.load %arg1[%c216, %c0_35] : memref<232x128xf32, #tpu.memory_space<vmem>>, vector<1x64xf32>
    %cst_36 = arith.constant dense<0.000000e+00> : vector<32x64xf32>
    %107 = tpu.matmul %104, %105, %cst_36 {dimension_numbers = #tpu.dot_dimension_numbers<[1], [0], [0], [1], [0, 0, 1, 1], [], []>} : vector<32x32xf32>, vector<32x64xf32>, vector<32x64xf32> -> vector<32x64xf32>
    %108 = vector.broadcast %106 : vector<1x64xf32> to vector<32x64xf32>
    %109 = arith.addf %107, %108 : vector<32x64xf32>
    %110 = math.tanh %109 : vector<32x64xf32>
    %c224 = arith.constant 224 : index
    %c0_37 = arith.constant 0 : index
    %111 = vector.load %arg1[%c224, %c0_37] : memref<232x128xf32, #tpu.memory_space<vmem>>, vector<1x64xf32>
    %c9 = arith.constant 9 : index
    %112 = memref.load %arg0[%c9] : memref<10xf32, #tpu.memory_space<smem>>
    %113 = vector.broadcast %111 : vector<1x64xf32> to vector<32x64xf32>
    %114 = arith.mulf %110, %113 : vector<32x64xf32>
    %cst_38 = arith.constant dense<0.000000e+00> : vector<32xf32>
    %115 = vector.multi_reduction <add>, %114, %cst_38 [1] : vector<32x64xf32> to vector<32xf32>
    %116 = vector.shape_cast %115 : vector<32xf32> to vector<32x1xf32>
    %117 = vector.broadcast %112 : f32 to vector<32x1xf32>
    %118 = arith.addf %116, %117 : vector<32x1xf32>
    %119 = vector.extract_strided_slice %118 {offsets = [0, 0], sizes = [16, 1], strides = [1, 1]} : vector<32x1xf32> to vector<16x1xf32>
    %120 = vector.extract_strided_slice %118 {offsets = [16, 0], sizes = [16, 1], strides = [1, 1]} : vector<32x1xf32> to vector<16x1xf32>
    %121 = arith.maximumf %119, %120 : vector<16x1xf32>
    %122 = arith.subf %119, %121 : vector<16x1xf32>
    %123 = math.exp %122 : vector<16x1xf32>
    %124 = arith.subf %120, %121 : vector<16x1xf32>
    %125 = math.exp %124 : vector<16x1xf32>
    %126 = arith.addf %123, %125 : vector<16x1xf32>
    %cst_39 = arith.constant 1.000000e+00 : f32
    %127 = vector.broadcast %cst_39 : f32 to vector<16x1xf32>
    %128 = arith.divf %127, %126 : vector<16x1xf32>
    %129 = arith.mulf %123, %128 : vector<16x1xf32>
    %130 = vector.broadcast %129 : vector<16x1xf32> to vector<16x32xf32>
    %131 = arith.mulf %130, %50 : vector<16x32xf32>
    %132 = arith.mulf %125, %128 : vector<16x1xf32>
    %133 = vector.broadcast %132 : vector<16x1xf32> to vector<16x32xf32>
    %134 = arith.mulf %133, %103 : vector<16x32xf32>
    %135 = arith.addf %131, %134 : vector<16x32xf32>
    %c0_40 = arith.constant 0 : index
    %c0_41 = arith.constant 0 : index
    %136 = vector.load %arg3[%c0_40, %c0_41] : memref<16x32xf32, #tpu.memory_space<vmem>>, vector<16x32xf32>
    tpu.vector_store %arg3[%c0_40, %c0_41], %135 {strides = array<i32>} : memref<16x32xf32, #tpu.memory_space<vmem>>, vector<16x32xf32>,
    return
  }
}

module attributes {stable_mosaic.version = 11 : i64} {
  func.func @kernel(%arg0: memref<10xf32, #tpu.memory_space<smem>>, %arg1: memref<232x128xf32, #tpu.memory_space<vmem>>, %arg2: memref<96x128xf32, #tpu.memory_space<vmem>>, %arg3: memref<16x32xf32, #tpu.memory_space<vmem>>) attributes {dimension_semantics = [], scalar_prefetch = 0 : i64, scratch_operands = 0 : i64, tpu.core_type = #tpu.core_type<tc>} {
    %c0 = arith.constant 0 : index
    %c0_0 = arith.constant 0 : index
    %0 = vector.load %arg2[%c0, %c0_0] : memref<96x128xf32, #tpu.memory_space<vmem>>, vector<16x128xf32>
    %c0_1 = arith.constant 0 : index
    %c0_2 = arith.constant 0 : index
    %1 = vector.load %arg1[%c0_1, %c0_2] : memref<232x128xf32, #tpu.memory_space<vmem>>, vector<128x32xf32>
    %c128 = arith.constant 128 : index
    %c0_3 = arith.constant 0 : index
    %2 = vector.load %arg1[%c128, %c0_3] : memref<232x128xf32, #tpu.memory_space<vmem>>, vector<16x32xf32>
    %cst = arith.constant dense<0.000000e+00> : vector<16x32xf32>
    %3 = tpu.matmul %0, %1, %cst {dimension_numbers = #tpu.dot_dimension_numbers<[1], [0], [0], [1], [0, 0, 1, 1], [], []>} : vector<16x128xf32>, vector<128x32xf32>, vector<16x32xf32> -> vector<16x32xf32>
    %4 = arith.addf %3, %2 : vector<16x32xf32>
    %c144 = arith.constant 144 : index
    %c0_4 = arith.constant 0 : index
    %5 = vector.load %arg1[%c144, %c0_4] : memref<232x128xf32, #tpu.memory_space<vmem>>, vector<32x64xf32>
    %c176 = arith.constant 176 : index
    %c0_5 = arith.constant 0 : index
    %6 = vector.load %arg1[%c176, %c0_5] : memref<232x128xf32, #tpu.memory_space<vmem>>, vector<1x64xf32>
    %cst_6 = arith.constant dense<0.000000e+00> : vector<16x64xf32>
    %7 = tpu.matmul %4, %5, %cst_6 {dimension_numbers = #tpu.dot_dimension_numbers<[1], [0], [0], [1], [0, 0, 1, 1], [], []>} : vector<16x32xf32>, vector<32x64xf32>, vector<16x64xf32> -> vector<16x64xf32>
    %8 = vector.broadcast %6 : vector<1x64xf32> to vector<16x64xf32>
    %9 = arith.addf %7, %8 : vector<16x64xf32>
    %10 = vector.extract_strided_slice %9 {offsets = [0, 0], sizes = [16, 32], strides = [1, 1]} : vector<16x64xf32> to vector<16x32xf32>
    %c16 = arith.constant 16 : index
    %c0_7 = arith.constant 0 : index
    %11 = vector.load %arg2[%c16, %c0_7] : memref<96x128xf32, #tpu.memory_space<vmem>>, vector<16x16xf32>
    %c0_8 = arith.constant 0 : index
    %12 = memref.load %arg0[%c0_8] : memref<10xf32, #tpu.memory_space<smem>>
    %13 = vector.broadcast %12 : f32 to vector<16x32xf32>
    %14 = arith.mulf %13, %10 : vector<16x32xf32>
    %cst_9 = arith.constant dense<0.000000e+00> : vector<16x32xf32>
    %15 = tpu.matmul %11, %14, %cst_9 {dimension_numbers = #tpu.dot_dimension_numbers<[1], [0], [0], [1], [0, 0, 1, 1], [], []>} : vector<16x16xf32>, vector<16x32xf32>, vector<16x32xf32> -> vector<16x32xf32>
    %c32 = arith.constant 32 : index
    %c0_10 = arith.constant 0 : index
    %16 = vector.load %arg2[%c32, %c0_10] : memref<96x128xf32, #tpu.memory_space<vmem>>, vector<16x32xf32>
    %c1 = arith.constant 1 : index
    %17 = memref.load %arg0[%c1] : memref<10xf32, #tpu.memory_space<smem>>
    %18 = vector.broadcast %17 : f32 to vector<16x32xf32>
    %19 = arith.mulf %18, %15 : vector<16x32xf32>
    %c2 = arith.constant 2 : index
    %20 = memref.load %arg0[%c2] : memref<10xf32, #tpu.memory_space<smem>>
    %21 = vector.broadcast %20 : f32 to vector<16x32xf32>
    %22 = arith.mulf %21, %10 : vector<16x32xf32>
    %23 = tpu.concatenate %19, %22 in 0 : vector<16x32xf32>, vector<16x32xf32> -> vector<32x32xf32>
    %cst_11 = arith.constant dense<0.000000e+00> : vector<16x32xf32>
    %24 = tpu.matmul %16, %23, %cst_11 {dimension_numbers = #tpu.dot_dimension_numbers<[1], [0], [0], [1], [0, 0, 1, 1], [], []>} : vector<16x32xf32>, vector<32x32xf32>, vector<16x32xf32> -> vector<16x32xf32>
    %cst_12 = arith.constant dense<0.000000e+00> : vector<16xf32>
    %25 = vector.multi_reduction <add>, %24, %cst_12 [1] : vector<16x32xf32> to vector<16xf32>
    %26 = vector.shape_cast %25 : vector<16xf32> to vector<16x1xf32>
    %cst_13 = arith.constant 3.200000e+01 : f32
    %27 = vector.broadcast %cst_13 : f32 to vector<16x1xf32>
    %28 = arith.divf %26, %27 : vector<16x1xf32>
    %29 = vector.broadcast %28 : vector<16x1xf32> to vector<16x32xf32>
    %30 = arith.subf %24, %29 : vector<16x32xf32>
    %31 = arith.mulf %30, %30 : vector<16x32xf32>
    %cst_14 = arith.constant dense<0.000000e+00> : vector<16xf32>
    %32 = vector.multi_reduction <add>, %31, %cst_14 [1] : vector<16x32xf32> to vector<16xf32>
    %33 = vector.shape_cast %32 : vector<16xf32> to vector<16x1xf32>
    %cst_15 = arith.constant 3.200000e+01 : f32
    %34 = vector.broadcast %cst_15 : f32 to vector<16x1xf32>
    %35 = arith.divf %33, %34 : vector<16x1xf32>
    %36 = vector.broadcast %28 : vector<16x1xf32> to vector<16x32xf32>
    %37 = arith.subf %24, %36 : vector<16x32xf32>
    %cst_16 = arith.constant 9.99999974E-6 : f32
    %38 = vector.broadcast %cst_16 : f32 to vector<16x1xf32>
    %39 = arith.addf %35, %38 : vector<16x1xf32>
    %40 = math.rsqrt %39 : vector<16x1xf32>
    %41 = vector.broadcast %40 : vector<16x1xf32> to vector<16x32xf32>
    %42 = arith.mulf %37, %41 : vector<16x32xf32>
    %cst_17 = arith.constant 5.000000e-01 : f32
    %43 = vector.broadcast %cst_17 : f32 to vector<16x32xf32>
    %44 = arith.mulf %43, %42 : vector<16x32xf32>
    %cst_18 = arith.constant 0.707106769 : f32
    %45 = vector.broadcast %cst_18 : f32 to vector<16x32xf32>
    %46 = arith.mulf %42, %45 : vector<16x32xf32>
    %47 = math.absf %46 : vector<16x32xf32>
    %cst_19 = arith.constant 0.327591091 : f32
    %48 = vector.broadcast %cst_19 : f32 to vector<16x32xf32>
    %49 = arith.mulf %48, %47 : vector<16x32xf32>
    %cst_20 = arith.constant 1.000000e+00 : f32
    %50 = vector.broadcast %cst_20 : f32 to vector<16x32xf32>
    %51 = arith.addf %50, %49 : vector<16x32xf32>
    %cst_21 = arith.constant 1.000000e+00 : f32
    %52 = vector.broadcast %cst_21 : f32 to vector<16x32xf32>
    %53 = arith.divf %52, %51 : vector<16x32xf32>
    %cst_22 = arith.constant 1.06140542 : f32
    %54 = vector.broadcast %cst_22 : f32 to vector<16x32xf32>
    %55 = arith.mulf %54, %53 : vector<16x32xf32>
    %cst_23 = arith.constant -1.45315206 : f32
    %56 = vector.broadcast %cst_23 : f32 to vector<16x32xf32>
    %57 = arith.addf %55, %56 : vector<16x32xf32>
    %58 = arith.mulf %57, %53 : vector<16x32xf32>
    %cst_24 = arith.constant 1.42141378 : f32
    %59 = vector.broadcast %cst_24 : f32 to vector<16x32xf32>
    %60 = arith.addf %58, %59 : vector<16x32xf32>
    %61 = arith.mulf %60, %53 : vector<16x32xf32>
    %cst_25 = arith.constant -0.284496725 : f32
    %62 = vector.broadcast %cst_25 : f32 to vector<16x32xf32>
    %63 = arith.addf %61, %62 : vector<16x32xf32>
    %64 = arith.mulf %63, %53 : vector<16x32xf32>
    %cst_26 = arith.constant 0.254829586 : f32
    %65 = vector.broadcast %cst_26 : f32 to vector<16x32xf32>
    %66 = arith.addf %64, %65 : vector<16x32xf32>
    %67 = arith.mulf %66, %53 : vector<16x32xf32>
    %cst_27 = arith.constant 0.000000e+00 : f32
    %68 = vector.broadcast %cst_27 : f32 to vector<16x32xf32>
    %69 = arith.subf %68, %47 : vector<16x32xf32>
    %70 = arith.mulf %69, %47 : vector<16x32xf32>
    %71 = math.exp %70 : vector<16x32xf32>
    %72 = arith.mulf %67, %71 : vector<16x32xf32>
    %cst_28 = arith.constant 1.000000e+00 : f32
    %73 = vector.broadcast %cst_28 : f32 to vector<16x32xf32>
    %74 = arith.subf %73, %72 : vector<16x32xf32>
    %cst_29 = arith.constant 0.000000e+00 : f32
    %75 = vector.broadcast %cst_29 : f32 to vector<16x32xf32>
    %76 = arith.cmpf oge, %46, %75 : vector<16x32xf32>
    %cst_30 = arith.constant 0.000000e+00 : f32
    %77 = vector.broadcast %cst_30 : f32 to vector<16x32xf32>
    %78 = arith.subf %77, %74 : vector<16x32xf32>
    %79 = arith.select %76, %74, %78 : vector<16x32xi1>, vector<16x32xf32>
    %cst_31 = arith.constant 1.000000e+00 : f32
    %80 = vector.broadcast %cst_31 : f32 to vector<16x32xf32>
    %81 = arith.addf %80, %79 : vector<16x32xf32>
    %82 = arith.mulf %44, %81 : vector<16x32xf32>
    %83 = vector.extract_strided_slice %9 {offsets = [0, 32], sizes = [16, 32], strides = [1, 1]} : vector<16x64xf32> to vector<16x32xf32>
    %c48 = arith.constant 48 : index
    %c0_32 = arith.constant 0 : index
    %84 = vector.load %arg2[%c48, %c0_32] : memref<96x128xf32, #tpu.memory_space<vmem>>, vector<16x16xf32>
    %c3 = arith.constant 3 : index
    %85 = memref.load %arg0[%c3] : memref<10xf32, #tpu.memory_space<smem>>
    %86 = vector.broadcast %85 : f32 to vector<16x32xf32>
    %87 = arith.mulf %86, %83 : vector<16x32xf32>
    %cst_33 = arith.constant dense<0.000000e+00> : vector<16x32xf32>
    %88 = tpu.matmul %84, %87, %cst_33 {dimension_numbers = #tpu.dot_dimension_numbers<[1], [0], [0], [1], [0, 0, 1, 1], [], []>} : vector<16x16xf32>, vector<16x32xf32>, vector<16x32xf32> -> vector<16x32xf32>
    %c64 = arith.constant 64 : index
    %c0_34 = arith.constant 0 : index
    %89 = vector.load %arg2[%c64, %c0_34] : memref<96x128xf32, #tpu.memory_space<vmem>>, vector<16x32xf32>
    %c4 = arith.constant 4 : index
    %90 = memref.load %arg0[%c4] : memref<10xf32, #tpu.memory_space<smem>>
    %91 = vector.broadcast %90 : f32 to vector<16x32xf32>
    %92 = arith.mulf %91, %88 : vector<16x32xf32>
    %c5 = arith.constant 5 : index
    %93 = memref.load %arg0[%c5] : memref<10xf32, #tpu.memory_space<smem>>
    %94 = vector.broadcast %93 : f32 to vector<16x32xf32>
    %95 = arith.mulf %94, %83 : vector<16x32xf32>
    %96 = tpu.concatenate %92, %95 in 0 : vector<16x32xf32>, vector<16x32xf32> -> vector<32x32xf32>
    %cst_35 = arith.constant dense<0.000000e+00> : vector<16x32xf32>
    %97 = tpu.matmul %89, %96, %cst_35 {dimension_numbers = #tpu.dot_dimension_numbers<[1], [0], [0], [1], [0, 0, 1, 1], [], []>} : vector<16x32xf32>, vector<32x32xf32>, vector<16x32xf32> -> vector<16x32xf32>
    %c80 = arith.constant 80 : index
    %c0_36 = arith.constant 0 : index
    %98 = vector.load %arg2[%c80, %c0_36] : memref<96x128xf32, #tpu.memory_space<vmem>>, vector<16x48xf32>
    %c6 = arith.constant 6 : index
    %99 = memref.load %arg0[%c6] : memref<10xf32, #tpu.memory_space<smem>>
    %100 = vector.broadcast %99 : f32 to vector<16x32xf32>
    %101 = arith.mulf %100, %97 : vector<16x32xf32>
    %c7 = arith.constant 7 : index
    %102 = memref.load %arg0[%c7] : memref<10xf32, #tpu.memory_space<smem>>
    %103 = vector.broadcast %102 : f32 to vector<16x32xf32>
    %104 = arith.mulf %103, %83 : vector<16x32xf32>
    %c8 = arith.constant 8 : index
    %105 = memref.load %arg0[%c8] : memref<10xf32, #tpu.memory_space<smem>>
    %106 = vector.broadcast %105 : f32 to vector<16x32xf32>
    %107 = arith.mulf %106, %88 : vector<16x32xf32>
    %108 = tpu.concatenate %101, %104, %107 in 0 : vector<16x32xf32>, vector<16x32xf32>, vector<16x32xf32> -> vector<48x32xf32>
    %cst_37 = arith.constant dense<0.000000e+00> : vector<16x32xf32>
    %109 = tpu.matmul %98, %108, %cst_37 {dimension_numbers = #tpu.dot_dimension_numbers<[1], [0], [0], [1], [0, 0, 1, 1], [], []>} : vector<16x48xf32>, vector<48x32xf32>, vector<16x32xf32> -> vector<16x32xf32>
    %cst_38 = arith.constant dense<0.000000e+00> : vector<16xf32>
    %110 = vector.multi_reduction <add>, %109, %cst_38 [1] : vector<16x32xf32> to vector<16xf32>
    %111 = vector.shape_cast %110 : vector<16xf32> to vector<16x1xf32>
    %cst_39 = arith.constant 3.200000e+01 : f32
    %112 = vector.broadcast %cst_39 : f32 to vector<16x1xf32>
    %113 = arith.divf %111, %112 : vector<16x1xf32>
    %114 = vector.broadcast %113 : vector<16x1xf32> to vector<16x32xf32>
    %115 = arith.subf %109, %114 : vector<16x32xf32>
    %116 = arith.mulf %115, %115 : vector<16x32xf32>
    %cst_40 = arith.constant dense<0.000000e+00> : vector<16xf32>
    %117 = vector.multi_reduction <add>, %116, %cst_40 [1] : vector<16x32xf32> to vector<16xf32>
    %118 = vector.shape_cast %117 : vector<16xf32> to vector<16x1xf32>
    %cst_41 = arith.constant 3.200000e+01 : f32
    %119 = vector.broadcast %cst_41 : f32 to vector<16x1xf32>
    %120 = arith.divf %118, %119 : vector<16x1xf32>
    %121 = vector.broadcast %113 : vector<16x1xf32> to vector<16x32xf32>
    %122 = arith.subf %109, %121 : vector<16x32xf32>
    %cst_42 = arith.constant 9.99999974E-6 : f32
    %123 = vector.broadcast %cst_42 : f32 to vector<16x1xf32>
    %124 = arith.addf %120, %123 : vector<16x1xf32>
    %125 = math.rsqrt %124 : vector<16x1xf32>
    %126 = vector.broadcast %125 : vector<16x1xf32> to vector<16x32xf32>
    %127 = arith.mulf %122, %126 : vector<16x32xf32>
    %cst_43 = arith.constant 5.000000e-01 : f32
    %128 = vector.broadcast %cst_43 : f32 to vector<16x32xf32>
    %129 = arith.mulf %128, %127 : vector<16x32xf32>
    %cst_44 = arith.constant 0.707106769 : f32
    %130 = vector.broadcast %cst_44 : f32 to vector<16x32xf32>
    %131 = arith.mulf %127, %130 : vector<16x32xf32>
    %132 = math.absf %131 : vector<16x32xf32>
    %cst_45 = arith.constant 0.327591091 : f32
    %133 = vector.broadcast %cst_45 : f32 to vector<16x32xf32>
    %134 = arith.mulf %133, %132 : vector<16x32xf32>
    %cst_46 = arith.constant 1.000000e+00 : f32
    %135 = vector.broadcast %cst_46 : f32 to vector<16x32xf32>
    %136 = arith.addf %135, %134 : vector<16x32xf32>
    %cst_47 = arith.constant 1.000000e+00 : f32
    %137 = vector.broadcast %cst_47 : f32 to vector<16x32xf32>
    %138 = arith.divf %137, %136 : vector<16x32xf32>
    %cst_48 = arith.constant 1.06140542 : f32
    %139 = vector.broadcast %cst_48 : f32 to vector<16x32xf32>
    %140 = arith.mulf %139, %138 : vector<16x32xf32>
    %cst_49 = arith.constant -1.45315206 : f32
    %141 = vector.broadcast %cst_49 : f32 to vector<16x32xf32>
    %142 = arith.addf %140, %141 : vector<16x32xf32>
    %143 = arith.mulf %142, %138 : vector<16x32xf32>
    %cst_50 = arith.constant 1.42141378 : f32
    %144 = vector.broadcast %cst_50 : f32 to vector<16x32xf32>
    %145 = arith.addf %143, %144 : vector<16x32xf32>
    %146 = arith.mulf %145, %138 : vector<16x32xf32>
    %cst_51 = arith.constant -0.284496725 : f32
    %147 = vector.broadcast %cst_51 : f32 to vector<16x32xf32>
    %148 = arith.addf %146, %147 : vector<16x32xf32>
    %149 = arith.mulf %148, %138 : vector<16x32xf32>
    %cst_52 = arith.constant 0.254829586 : f32
    %150 = vector.broadcast %cst_52 : f32 to vector<16x32xf32>
    %151 = arith.addf %149, %150 : vector<16x32xf32>
    %152 = arith.mulf %151, %138 : vector<16x32xf32>
    %cst_53 = arith.constant 0.000000e+00 : f32
    %153 = vector.broadcast %cst_53 : f32 to vector<16x32xf32>
    %154 = arith.subf %153, %132 : vector<16x32xf32>
    %155 = arith.mulf %154, %132 : vector<16x32xf32>
    %156 = math.exp %155 : vector<16x32xf32>
    %157 = arith.mulf %152, %156 : vector<16x32xf32>
    %cst_54 = arith.constant 1.000000e+00 : f32
    %158 = vector.broadcast %cst_54 : f32 to vector<16x32xf32>
    %159 = arith.subf %158, %157 : vector<16x32xf32>
    %cst_55 = arith.constant 0.000000e+00 : f32
    %160 = vector.broadcast %cst_55 : f32 to vector<16x32xf32>
    %161 = arith.cmpf oge, %131, %160 : vector<16x32xf32>
    %cst_56 = arith.constant 0.000000e+00 : f32
    %162 = vector.broadcast %cst_56 : f32 to vector<16x32xf32>
    %163 = arith.subf %162, %159 : vector<16x32xf32>
    %164 = arith.select %161, %159, %163 : vector<16x32xi1>, vector<16x32xf32>
    %cst_57 = arith.constant 1.000000e+00 : f32
    %165 = vector.broadcast %cst_57 : f32 to vector<16x32xf32>
    %166 = arith.addf %165, %164 : vector<16x32xf32>
    %167 = arith.mulf %129, %166 : vector<16x32xf32>
    %168 = tpu.concatenate %82, %167 in 0 : vector<16x32xf32>, vector<16x32xf32> -> vector<32x32xf32>
    %c184 = arith.constant 184 : index
    %c0_58 = arith.constant 0 : index
    %169 = vector.load %arg1[%c184, %c0_58] : memref<232x128xf32, #tpu.memory_space<vmem>>, vector<32x64xf32>
    %c216 = arith.constant 216 : index
    %c0_59 = arith.constant 0 : index
    %170 = vector.load %arg1[%c216, %c0_59] : memref<232x128xf32, #tpu.memory_space<vmem>>, vector<1x64xf32>
    %cst_60 = arith.constant dense<0.000000e+00> : vector<32x64xf32>
    %171 = tpu.matmul %168, %169, %cst_60 {dimension_numbers = #tpu.dot_dimension_numbers<[1], [0], [0], [1], [0, 0, 1, 1], [], []>} : vector<32x32xf32>, vector<32x64xf32>, vector<32x64xf32> -> vector<32x64xf32>
    %172 = vector.broadcast %170 : vector<1x64xf32> to vector<32x64xf32>
    %173 = arith.addf %171, %172 : vector<32x64xf32>
    %174 = math.tanh %173 : vector<32x64xf32>
    %c224 = arith.constant 224 : index
    %c0_61 = arith.constant 0 : index
    %175 = vector.load %arg1[%c224, %c0_61] : memref<232x128xf32, #tpu.memory_space<vmem>>, vector<1x64xf32>
    %c9 = arith.constant 9 : index
    %176 = memref.load %arg0[%c9] : memref<10xf32, #tpu.memory_space<smem>>
    %177 = vector.broadcast %175 : vector<1x64xf32> to vector<32x64xf32>
    %178 = arith.mulf %174, %177 : vector<32x64xf32>
    %cst_62 = arith.constant dense<0.000000e+00> : vector<32xf32>
    %179 = vector.multi_reduction <add>, %178, %cst_62 [1] : vector<32x64xf32> to vector<32xf32>
    %180 = vector.shape_cast %179 : vector<32xf32> to vector<32x1xf32>
    %181 = vector.broadcast %176 : f32 to vector<32x1xf32>
    %182 = arith.addf %180, %181 : vector<32x1xf32>
    %183 = vector.extract_strided_slice %182 {offsets = [0, 0], sizes = [16, 1], strides = [1, 1]} : vector<32x1xf32> to vector<16x1xf32>
    %184 = vector.extract_strided_slice %182 {offsets = [16, 0], sizes = [16, 1], strides = [1, 1]} : vector<32x1xf32> to vector<16x1xf32>
    %185 = arith.maximumf %183, %184 : vector<16x1xf32>
    %186 = arith.subf %183, %185 : vector<16x1xf32>
    %187 = math.exp %186 : vector<16x1xf32>
    %188 = arith.subf %184, %185 : vector<16x1xf32>
    %189 = math.exp %188 : vector<16x1xf32>
    %190 = arith.addf %187, %189 : vector<16x1xf32>
    %cst_63 = arith.constant 1.000000e+00 : f32
    %191 = vector.broadcast %cst_63 : f32 to vector<16x1xf32>
    %192 = arith.divf %191, %190 : vector<16x1xf32>
    %193 = arith.mulf %187, %192 : vector<16x1xf32>
    %194 = vector.broadcast %193 : vector<16x1xf32> to vector<16x32xf32>
    %195 = arith.mulf %194, %82 : vector<16x32xf32>
    %196 = arith.mulf %189, %192 : vector<16x1xf32>
    %197 = vector.broadcast %196 : vector<16x1xf32> to vector<16x32xf32>
    %198 = arith.mulf %197, %167 : vector<16x32xf32>
    %199 = arith.addf %195, %198 : vector<16x32xf32>
    %c0_64 = arith.constant 0 : index
    %c0_65 = arith.constant 0 : index
    %200 = vector.load %arg3[%c0_64, %c0_65] : memref<16x32xf32, #tpu.memory_space<vmem>>, vector<16x32xf32>
    tpu.vector_store %arg3[%c0_64, %c0_65], %199 {strides = array<i32>} : memref<16x32xf32, #tpu.memory_space<vmem>>, vector<16x32xf32>,
    return
  }
}

</mosaic_0001>

<bundles_post_ra>
// kernel: tpu_custom_call.1
= control target key start
LH: loop header
LB: loop body
LE: loop exit
PB: predicated region body
PF: predicated region fallthrough
CT: control target
= control target key end

     0   :  { %8 = vsyncpa [#allocation5], 0  ;;  %s1120_s0 = inlined_call_operand.hbm [shape: f32[10], index: 0, kind: input, shape index: {}]   ;;  %s1121_s1 = inlined_call_operand.hbm [shape: f32[232,128], index: 1, kind: input, shape index: {}]   ;;  %s1122_s2 = inlined_call_operand.hbm [shape: f32[96,128], index: 2, kind: input, shape index: {}]   ;;  %s1123_s3 = inlined_call_operand.hbm [shape: f32[16,32], index: 3, kind: output, shape index: {}]  }
   0x1   :  { %9 = vsyncpa [#allocation3], 0 }
   0x2   :  { %10 = vsyncpa [#allocation8], 0 }
   0x3   :  { %11 = vsyncpa [#allocation4], 0  ;;  %s17_s14 = sshll.u32 %s1120_s0, 4  ;;  %s25_s17 = sshll.u32 %s1121_s1, 4  ;;  %s18_s14 = int_to_ptr.hbm [resolvable:$true] %s17_s14  ;;  %s26_s17 = int_to_ptr.hbm [resolvable:$true] %s25_s17 }
   0x4   :  { %s971_s18 = smov [#allocation2]   ;;  %s972_s19 = smov [#allocation6]  }
   0x5   :  { %20 = dma.hbm_to_smem %s18_s14, 16, %s971_s18, [#allocation5]  }
   0x6   :  { %s27_s20 = sshll.u32 %s972_s19, 4  ;;  %s973_s21 = smov 128   ;;  %s28_s20 = int_to_ptr.vmem [resolvable:$true] %s27_s20 }
   0x7   :  { %s974_s22 = smov 8   ;;  %s38_s0 = sshll.u32 %s1122_s2, 4  ;;  %s39_s0 = int_to_ptr.hbm [resolvable:$true] %s38_s0 }
   0x8   :  { %33 = dma.hbm_to_vmem [thread:$0]  %s26_s17, 3712, %s28_s20, [#allocation3], %s973_s21, %s973_s21, %s974_s22  }
   0x9   :  { %s975_s25 = smov [#allocation7]  }
   0xa   :  { %s40_s26 = sshll.u32 %s975_s25, 4  ;;  %s41_s26 = int_to_ptr.vmem [resolvable:$true] %s40_s26 }
   0xb   :  { %46 = dma.hbm_to_vmem [thread:$0]  %s39_s0, 1536, %s41_s26, [#allocation8], %s973_s21, %s973_s21, %s974_s22  }
   0xc   :  { %963 = dma.done.wait [#allocation5], 16  }
   0xd   :  { %964 = vsyncadd [#allocation5], 4294967280 }
   0xe   :  { %965 = dma.done.wait [#allocation3], 3712  }
   0xf   :  { %966 = vsyncadd [#allocation3], 4294963584 }
  0x10   :  { %967 = dma.done.wait [#allocation8], 1536  }
  0x11   :  { %968 = vsyncadd [#allocation8], 4294965760 }
  0x12   :  { %59 = sfence }
  0x13   :  { %v77_v0 = vld [vmem:[#allocation6 + $0x78] sm:$0xff]  ;;  %v76_v1 = vld [vmem:[#allocation6 + $0x70] sm:$0xff]  ;;  %v75_v2 = vld [vmem:[#allocation6 + $0x68] sm:$0xff]  ;;  %vm109_vm0 = vcmask 261120   ;;  %s800_s1 = sld [smem:[#allocation2 + $0x7]]  ;;  %s976_s30 = smov 96  }
  0x14   :  { %80 = vmatpush.msra.mxu0 %v77_v0  ;;  %v74_v3 = vld [vmem:[#allocation6 + $0x60] sm:$0xff]  ;;  %v73_v4 = vld [vmem:[#allocation6 + $0x58] sm:$0xff]  ;;  %v72_v5 = vld [vmem:[#allocation6 + $0x50] sm:$0xff]  ;;  %s792_s2 = sld [smem:[#allocation2 + $0x3]]  ;;  %vm145_vm1 = vcmask 130048   ;;  %vm465_vm2 = vcmask 392192  }
  0x15   :  { %v106_v6 = vld [vmem:[#allocation6 + $0xa8] sm:$0xff]  ;;  %v105_v7 = vld [vmem:[#allocation6 + $0xa0] sm:$0xff]  ;;  %v69_v10 = vld [vmem:[#allocation6 + $0x38] sm:$0xff]  ;;  %s141_s27 = sld [smem:[#allocation2]]  ;;  %s978_s9 = smov [#allocation9]  }
  0x16   :  { %81 = vmatpush.msra.mxu0 %v76_v1  ;;  %128 = vmatpush.msra.mxu1 %v106_v6  ;;  %v71_v8 = vld [vmem:[#allocation6 + $0x48] sm:$0xff]  ;;  %v70_v9 = vld [vmem:[#allocation6 + $0x40] sm:$0xff]  ;;  %v68_v11 = vld [vmem:[#allocation6 + $0x30] sm:$0xff]  ;;  %s787_s28 = sld [smem:[#allocation2 + $0x2]]  ;;  %s765_s10 = sshll.u32 %s978_s9, 4  ;;  %s766_s10 = int_to_ptr.vmem [resolvable:$true] %s765_s10 }
  0x17   :  { %811 = vmatpush.msra.mxu3 %v106_v6  ;;  %v67_v12 = vld [vmem:[#allocation6 + $0x28] sm:$0xff]  ;;  %v66_v13 = vld [vmem:[#allocation6 + $0x20] sm:$0xff]  ;;  %v65_v14 = vld [vmem:[#allocation6 + $0x18] sm:$0xff]  ;;  %s796_s29 = sld [smem:[#allocation2 + $0x5]]  ;;  %s767_s13 = sshll.u32 %s1123_s3, 4  ;;  %s768_s13 = int_to_ptr.hbm [resolvable:$true] %s767_s13 }
  0x18   :  { %82 = vmatpush.msra.mxu0 %v75_v2  ;;  %129 = vmatpush.msra.mxu1 %v105_v7  ;;  %v64_v15 = vld [vmem:[#allocation6 + $0x10] sm:$0xff]  ;;  %v63_v16 = vld [vmem:[#allocation6 + $0x8] sm:$0xff]  ;;  %v62_v17 = vld [vmem:[#allocation6] sm:$0xff]  ;;  %s786_s4 = sld [smem:[#allocation2 + $0x1]] }
  0x19   :  { %812 = vmatpush.msra.mxu3 %v105_v7  ;;  %v60_v18 = vld [vmem:[#allocation7] sm:$0xff]  ;;  %v61_v19 = vld [vmem:[#allocation7 + $0x8] sm:$0xff]  ;;  %v104_v20 = vld [vmem:[#allocation6 + $0x98] sm:$0xff]  ;;  %v450_v31 = vstv %s800_s1  ;;  %s795_s5 = sld [smem:[#allocation2 + $0x4]] }
  0x1a   :  { %83 = vmatpush.msra.mxu0 %v74_v3  ;;  %130 = vmatpush.msra.mxu1 %v104_v20  ;;  %v103_v21 = vld [vmem:[#allocation6 + $0x90] sm:$0xff]  ;;  %v78_v22 = vld [vmem:[#allocation6 + $0x80] sm:$0xff]  ;;  %v79_v25 = vld [vmem:[#allocation6 + $0x88] sm:$0xff]  ;;  %v356_v32 = vstv %s792_s2  ;;  %s801_s6 = sld [smem:[#allocation2 + $0x8]] }
  0x1b   :  { %813 = vmatpush.msra.mxu3 %v104_v20  ;;  %v838_v28 = vld [vmem:[#allocation6 + $0xb0] ss:$0 sm:$0xff]  ;;  %v142_v35 = vstv %s141_s27  ;;  %v139_v51 = vld [vmem:[#allocation7 + $0x10] sm:$0xff]  ;;  %v140_v52 = vld [vmem:[#allocation7 + $0x18] sm:$0xff]  ;;  %s799_s7 = sld [smem:[#allocation2 + $0x6]] }
  0x1c   :  { %84 = vmatpush.msra.mxu0 %v73_v4  ;;  %131 = vmatpush.msra.mxu1 %v103_v21  ;;  %v182_v36 = vstv %s787_s28  ;;  %v353_v56 = vld [vmem:[#allocation7 + $0x30] sm:$0xff]  ;;  %v354_v60 = vld [vmem:[#allocation7 + $0x38] sm:$0xff]  ;;  %v175_v2 = vld [vmem:[#allocation7 + $0x20] sm:$0xff]  ;;  %s810_s8 = sld [smem:[#allocation2 + $0x9]] }
  0x1d   :  { %814 = vmatpush.msra.mxu3 %v103_v21  ;;  %v403_v47 = vstv %s796_s29  ;;  %v176_v3 = vld [vmem:[#allocation7 + $0x28] sm:$0xff] }
  0x1e   :  { %85 = vmatpush.msra.mxu0 %v72_v5  ;;  %v178_v62 = vstv %s786_s4 }
  0x1f   :  { %v399_v5 = vstv %s795_s5 }
  0x20   :  { %86 = vmatpush.msra.mxu0 %v71_v8  ;;  %v454_v6 = vstv %s801_s6 }
  0x22   :  { %87 = vmatpush.msra.mxu0 %v70_v9 }
  0x24   :  { %88 = vmatpush.msra.mxu0 %v69_v10 }
  0x26   :  { %89 = vmatpush.msra.mxu0 %v68_v11 }
  0x28   :  { %90 = vmatpush.msra.mxu0 %v67_v12 }
  0x2a   :  { %91 = vmatpush.msra.mxu0 %v66_v13  ;;  %v396_v13 = vld [vmem:[#allocation7 + $0x40] sm:$0xff] }
  0x2c   :  { %92 = vmatpush.msra.mxu0 %v65_v14 }
  0x2e   :  { %93 = vmatpush.msra.mxu0 %v64_v15 }
  0x30   :  { %94 = vmatpush.msra.mxu0 %v63_v16  ;;  %v397_v16 = vld [vmem:[#allocation7 + $0x48] sm:$0xff] }
  0x32   :  { %95 = vmatpush.msra.mxu0 %v62_v17 }
  0x33   :  { %96 = vmatmul.f32.vlgmr.msra.gmra.mxu0 %v60_v18 }
  0x3b   :  { %99 = vmatmul.f32.gmra.mxu0 %v61_v19 }
  0xb0   :  { %v97_v23 = vpop.f32.mrf.mxu0 }
  0xb1   :  { %v98_v24 = vadd.f32 %v97_v23, %v78_v22  ;;  %v446_v22 = vstv %s799_s7 }
  0xb3   :  { %782 = vmatmul.msk.f32.vlgmr.msra.gmra.mxu1 %vm109_vm0, %v98_v24 }
  0xb8   :  { %v100_v26 = vpop.f32.mrf.mxu0 }
  0xb9   :  { %v101_v27 = vadd.f32 %v100_v26, %v79_v25  ;;  %v443_v26 = vld [vmem:[#allocation7 + $0x50] sm:$0xff] }
  0xbb   :  { %783 = vmatmul.msk.f32.vlgmr.msra.gmra.mxu3 %vm109_vm0, %v101_v27  ;;  %v444_v27 = vld [vmem:[#allocation7 + $0x58] sm:$0xff] }
 0x130   :  { %v133_v29 = vpop.f32.mrf.mxu1 }
 0x131   :  { %v134_v30 = vadd.f32 %v838_v28, %v133_v29 }
 0x133   :  { %v451_v37 = vmul.f32 %v450_v31, %v134_v30  ;;  %v357_v38 = vmul.f32 %v356_v32, %v134_v30  ;;  %v143_v45 = vmul.f32 %v142_v35, %v134_v30  ;;  %v183_v46 = vmul.f32 %v182_v36, %v134_v30 }
 0x134   :  { %v404_v49 = vmul.f32 %v403_v47, %v134_v30 }
 0x13e   :  { %v136_v33 = vpop.f32.mrf.mxu3 }
 0x13f   :  { %v137_v34 = vadd.f32 %v838_v28, %v136_v33  ;;  %v977_v28 = vmov 32.0  }
 0x140   :  { %841 = vrcp.f32 %v977_v28 }
 0x141   :  { %v144_v39 = vmul.f32 %v142_v35, %v137_v34  ;;  %v184_v40 = vmul.f32 %v182_v36, %v137_v34  ;;  %v452_v41 = vmul.f32 %v450_v31, %v137_v34  ;;  %v358_v42 = vmul.f32 %v356_v32, %v137_v34 }
 0x142   :  { %v405_v48 = vmul.f32 %v403_v47, %v137_v34 }
 0x143   :  { %166 = vmatpush.msrb.mxu1 %v144_v39  ;;  %203 = vmatpush.msrb.mxu3 %v184_v40  ;;  %v833_v43 = vpack.i.bf16 %v451_v37, %v452_v41  ;;  %v823_v44 = vpack.i.bf16 %v357_v38, %v358_v42 }
 0x144   :  { %v828_v50 = vpack.i.bf16 %v404_v49, %v405_v48 }
 0x145   :  { %834 = vrot.lane.b32.xlu1 %v833_v43, %s976_s30  ;;  %824 = vrot.lane.b32.xlu0 %v823_v44, %s976_s30 }
 0x146   :  { %167 = vmatpush.msrb.mxu1 %v143_v45  ;;  %204 = vmatpush.msrb.mxu3 %v183_v46  ;;  %v842_v29 = vpop.eup %841 }
 0x147   :  { %784 = vmatmul.msk.f32.vlgmr.msrb.gmra.mxu1 %vm145_vm1, %v139_v51  ;;  %v221_v30 = vmul.f32 32.0, %v842_v29  ;;  %vm225_vm3 = vweird.f32 %v842_v29 }
 0x149   :  { %v222_v31 = vsub.f32 1.0, %v221_v30 }
 0x14b   :  { %v223_v32 = vmul.f32 %v842_v29, %v222_v31 }
 0x14d   :  { %829 = vrot.lane.b32.xlu0 %v828_v50, %s976_s30  ;;  %v224_v33 = vadd.f32 %v842_v29, %v223_v32 }
 0x14f   :  { %785 = vmatmul.msk.f32.gmra.mxu1 %vm145_vm1, %v140_v52  ;;  %v1026_v34 = vsel %vm225_vm3, %v842_v29, %v224_v33 }
 0x1b7   :  { %v825_v53 = vpop.permute.xlu0 %824  ;;  %v835_v10 = vpop.permute.xlu1 %834 }
 0x1b8   :  { %v826_v54 = vunpack.i.l.bf16 %v825_v53  ;;  %v827_v55 = vunpack.i.h.bf16 %v825_v53  ;;  %v836_v14 = vunpack.i.l.bf16 %v835_v10  ;;  %v837_v15 = vunpack.i.h.bf16 %v835_v10  ;;  %v630_v53 = vld [vmem:[#allocation6 + $0xd0] sm:$0xff] }
 0x1ba   :  { %387 = vmatpush.msra.mxu2 %v826_v54  ;;  %v629_v54 = vld [vmem:[#allocation6 + $0xc8] sm:$0xff] }
 0x1bc   :  { %388 = vmatpush.msra.mxu2 %v827_v55 }
 0x1bd   :  { %793 = vmatmul.msk.f32.vlgmr.msra.gmra.mxu2 %vm145_vm1, %v353_v56 }
 0x1be   :  { %657 = vmatpush.msrb.mxu2 %v630_v53 }
 0x1bf   :  { %v830_v57 = vpop.permute.xlu0 %829 }
 0x1c0   :  { %v831_v58 = vunpack.i.l.bf16 %v830_v57  ;;  %v832_v59 = vunpack.i.h.bf16 %v830_v57  ;;  %658 = vmatpush.msrb.mxu2 %v629_v54 }
 0x1c2   :  { %432 = vmatpush.msra.mxu1 %v831_v58  ;;  %v628_v58 = vld [vmem:[#allocation6 + $0xc0] sm:$0xff] }
 0x1c3   :  { %659 = vmatpush.msrb.mxu2 %v628_v58 }
 0x1c4   :  { %433 = vmatpush.msra.mxu1 %v832_v59  ;;  %v169_v61 = vpop.f32.mrf.mxu1 }
 0x1c5   :  { %794 = vmatmul.msk.f32.gmra.mxu2 %vm145_vm1, %v354_v60  ;;  %v179_v0 = vmul.f32 %v178_v62, %v169_v61  ;;  %v627_v61 = vld [vmem:[#allocation6 + $0xb8] sm:$0xff] }
 0x1c6   :  { %660 = vmatpush.msrb.mxu2 %v627_v61 }
 0x1cc   :  { %v172_v63 = vpop.f32.mrf.mxu1 }
 0x1cd   :  { %v180_v1 = vmul.f32 %v178_v62, %v172_v63 }
 0x1cf   :  { %205 = vmatpush.msrb.mxu3 %v180_v1 }
 0x1d1   :  { %206 = vmatpush.msrb.mxu3 %v179_v0 }
 0x1d2   :  { %788 = vmatmul.msk.f32.vlgmr.msrb.gmra.mxu3 %vm109_vm0, %v175_v2 }
 0x1da   :  { %789 = vmatmul.msk.f32.gmra.mxu3 %vm109_vm0, %v176_v3 }
 0x240   :  { %v390_v4 = vpop.f32.mrf.mxu2 }
 0x241   :  { %v400_v11 = vmul.f32 %v399_v5, %v390_v4  ;;  %v455_v12 = vmul.f32 %v454_v6, %v390_v4 }
 0x248   :  { %v393_v7 = vpop.f32.mrf.mxu2 }
 0x249   :  { %v401_v8 = vmul.f32 %v399_v5, %v393_v7  ;;  %v456_v9 = vmul.f32 %v454_v6, %v393_v7 }
 0x24b   :  { %434 = vmatpush.msra.mxu1 %v401_v8  ;;  %482 = vmatpush.msra.mxu3 %v456_v9 }
 0x24d   :  { %435 = vmatpush.msra.mxu1 %v400_v11  ;;  %483 = vmatpush.msra.mxu3 %v455_v12 }
 0x24e   :  { %797 = vmatmul.msk.f32.vlgmr.msra.gmra.mxu1 %vm109_vm0, %v396_v13 }
 0x24f   :  { %484 = vmatpush.msra.mxu3 %v836_v14 }
 0x251   :  { %485 = vmatpush.msra.mxu3 %v837_v15 }
 0x255   :  { %v208_v17 = vpop.f32.mrf.mxu3 }
 0x256   :  { %798 = vmatmul.msk.f32.gmra.mxu1 %vm109_vm0, %v397_v16  ;;  %v214_v18 = vsel %vm109_vm0, %v208_v17, 0.0 }
 0x257   :  { %215 = vadd.xlane.f32.xlu1 %v214_v18 }
 0x25d   :  { %v211_v19 = vpop.f32.mrf.mxu3 }
 0x25e   :  { %v217_v20 = vsel %vm109_vm0, %v211_v19, 0.0 }
 0x25f   :  { %218 = vadd.xlane.f32.xlu2 %v217_v20 }
 0x2ca   :  { %v216_v35 = vpop.xlane.xlu1 %215 }
 0x2cb   :  { %v437_v21 = vpop.f32.mrf.mxu1  ;;  %v227_v36 = vmul.f32 %v1026_v34, %v216_v35 }
 0x2cc   :  { %v447_v25 = vmul.f32 %v446_v22, %v437_v21 }
 0x2cd   :  { %v229_v38 = vsub.f32 %v208_v17, %v227_v36 }
 0x2cf   :  { %v231_v42 = vmul.f32 %v229_v38, %v229_v38 }
 0x2d1   :  { %v233_v46 = vsel %vm109_vm0, %v231_v42, 0.0 }
 0x2d2   :  { %v219_v40 = vpop.xlane.xlu2 %218 }
 0x2d3   :  { %v440_v23 = vpop.f32.mrf.mxu1  ;;  %v228_v41 = vmul.f32 %v1026_v34, %v219_v40 }
 0x2d4   :  { %v448_v24 = vmul.f32 %v446_v22, %v440_v23 }
 0x2d5   :  { %v230_v44 = vsub.f32 %v211_v19, %v228_v41 }
 0x2d6   :  { %486 = vmatpush.msra.mxu3 %v448_v24 }
 0x2d7   :  { %v232_v47 = vmul.f32 %v230_v44, %v230_v44 }
 0x2d8   :  { %487 = vmatpush.msra.mxu3 %v447_v25 }
 0x2d9   :  { %802 = vmatmul.msk.f32.vlgmr.msra.gmra.mxu3 %vm465_vm2, %v443_v26  ;;  %v236_v48 = vsel %vm109_vm0, %v232_v47, 0.0 }
 0x2e1   :  { %803 = vmatmul.msk.f32.gmra.mxu3 %vm465_vm2, %v444_v27 }
 0x35c   :  { %v489_v37 = vpop.f32.mrf.mxu3 }
 0x35d   :  { %v495_v39 = vsel %vm109_vm0, %v489_v37, 0.0 }
 0x35e   :  { %496 = vadd.xlane.f32.xlu2 %v495_v39 }
 0x364   :  { %v492_v43 = vpop.f32.mrf.mxu3 }
 0x365   :  { %v498_v45 = vsel %vm109_vm0, %v492_v43, 0.0 }
 0x366   :  { %499 = vadd.xlane.f32.xlu0 %v498_v45  ;;  %234 = vadd.xlane.f32.xlu2 %v233_v46 }
 0x36e   :  { %237 = vadd.xlane.f32.xlu2 %v236_v48 }
 0x3d1   :  { %v497_v49 = vpop.xlane.xlu2 %496 }
 0x3d2   :  { %v501_v50 = vmul.f32 %v497_v49, %v1026_v34 }
 0x3d4   :  { %v1035_v51 = vsub.f32 %v489_v37, %v501_v50 }
 0x3d6   :  { %v505_v52 = vmul.f32 %v1035_v51, %v1035_v51 }
 0x3d8   :  { %v507_v55 = vsel %vm109_vm0, %v505_v52, 0.0 }
 0x3d9   :  { %v500_v56 = vpop.xlane.xlu0 %499  ;;  %508 = vadd.xlane.f32.xlu2 %v507_v55  ;;  %v235_v57 = vpop.xlane.xlu2 %234 }
 0x3da   :  { %v502_v59 = vmul.f32 %v500_v56, %v1026_v34  ;;  %v239_v60 = vmul.f32 %v235_v57, %v1026_v34 }
 0x3dc   :  { %v1042_v62 = vsub.f32 %v492_v43, %v502_v59  ;;  %v241_v63 = vadd.f32 1e-05, %v239_v60 }
 0x3de   :  { %843 = vrsqrt.f32 %v241_v63  ;;  %v506_v0 = vmul.f32 %v1042_v62, %v1042_v62  ;;  %vm249_vm5 = vweird.f32 %v241_v63 }
 0x3e0   :  { %v510_v1 = vsel %vm109_vm0, %v506_v0, 0.0 }
 0x3e1   :  { %511 = vadd.xlane.f32.xlu2 %v510_v1  ;;  %v238_v2 = vpop.xlane.xlu2 %237 }
 0x3e2   :  { %v240_v3 = vmul.f32 %v238_v2, %v1026_v34 }
 0x3e4   :  { %v844_v4 = vpop.eup %843  ;;  %v242_v5 = vadd.f32 1e-05, %v240_v3 }
 0x3e5   :  { %v244_v6 = vmul.f32 %v844_v4, %v241_v63  ;;  %vm250_vm4 = vweird.f32 %v844_v4 }
 0x3e6   :  { %845 = vrsqrt.f32 %v242_v5  ;;  %vm251_vm6 = vmor %vm249_vm5, %vm250_vm4  ;;  %vm259_vm8 = vweird.f32 %v242_v5 }
 0x3e7   :  { %v245_v7 = vmul.f32 %v844_v4, %v244_v6 }
 0x3e9   :  { %v246_v8 = vmul.f32 0.5, %v245_v7 }
 0x3eb   :  { %v247_v9 = vsub.f32 1.5, %v246_v8 }
 0x3ec   :  { %v846_v10 = vpop.eup %845 }
 0x3ed   :  { %v248_v11 = vmul.f32 %v844_v4, %v247_v9  ;;  %v254_v12 = vmul.f32 %v846_v10, %v242_v5  ;;  %vm260_vm7 = vweird.f32 %v846_v10 }
 0x3ee   :  { %vm261_vm9 = vmor %vm259_vm8, %vm260_vm7 }
 0x3ef   :  { %v252_v13 = vsel %vm251_vm6, %v844_v4, %v248_v11  ;;  %v255_v14 = vmul.f32 %v846_v10, %v254_v12 }
 0x3f0   :  { %v1048_v15 = vmul.f32 %v252_v13, %v229_v38 }
 0x3f1   :  { %v256_v16 = vmul.f32 0.5, %v255_v14 }
 0x3f2   :  { %v1051_v17 = vmul.f32 0.70710677, %v1048_v15 }
 0x3f3   :  { %v257_v18 = vsub.f32 1.5, %v256_v16 }
 0x3f4   :  { %v269_v19 = vmul.f32 %v1051_v17, %v1051_v17 }
 0x3f5   :  { %v258_v20 = vmul.f32 %v846_v10, %v257_v18 }
 0x3f6   :  { %v270_v21 = vmin.f32 %v269_v19, 16.0 }
 0x3f7   :  { %v262_v22 = vsel %vm261_vm9, %v846_v10, %v258_v20 }
 0x3f8   :  { %v271_v23 = vmul.f32 2.1237322e-06, %v270_v21  ;;  %v282_v24 = vmul.f32 3.8918573e-05, %v270_v21  ;;  %v1055_v25 = vmul.f32 %v262_v22, %v230_v44 }
 0x3fa   :  { %v272_v26 = vadd.f32 0.00028619796, %v271_v23  ;;  %v283_v27 = vadd.f32 0.001143296, %v282_v24  ;;  %v1058_v28 = vmul.f32 0.70710677, %v1055_v25 }
 0x3fc   :  { %v273_v29 = vmul.f32 %v272_v26, %v270_v21  ;;  %v284_v30 = vmul.f32 %v283_v27, %v270_v21  ;;  %v309_v31 = vmul.f32 %v1058_v28, %v1058_v28 }
 0x3fe   :  { %v285_v32 = vadd.f32 0.014752088, %v284_v30  ;;  %v274_v33 = vadd.f32 0.0036580483, %v273_v29  ;;  %v310_v35 = vmin.f32 %v309_v31, 16.0  ;;  %v265_v29 = vmul.f32 0.5, %v1048_v15 }
 0x400   :  { %v286_v36 = vmul.f32 %v285_v32, %v270_v21  ;;  %v311_v37 = vmul.f32 2.1237322e-06, %v310_v35  ;;  %v322_v38 = vmul.f32 3.8918573e-05, %v310_v35  ;;  %v275_v40 = vmul.f32 %v274_v33, %v270_v21 }
 0x402   :  { %v287_v39 = vadd.f32 0.112945676, %v286_v36  ;;  %v312_v41 = vadd.f32 0.00028619796, %v311_v37  ;;  %v323_v42 = vadd.f32 0.001143296, %v322_v38 }
 0x403   :  { %v276_v47 = vadd.f32 0.05243302, %v275_v40 }
 0x404   :  { %v288_v43 = vmul.f32 %v287_v39, %v270_v21  ;;  %v313_v44 = vmul.f32 %v312_v41, %v310_v35  ;;  %v324_v45 = vmul.f32 %v323_v42, %v310_v35  ;;  %v266_v39 = vmul.f32 0.5, %v1055_v25 }
 0x405   :  { %v277_v54 = vmul.f32 %v276_v47, %v270_v21 }
 0x406   :  { %v289_v46 = vadd.f32 0.4994258, %v288_v43  ;;  %v325_v48 = vadd.f32 0.014752088, %v324_v45  ;;  %v314_v50 = vadd.f32 0.0036580483, %v313_v44 }
 0x407   :  { %v278_v58 = vadd.f32 0.18741608, %v277_v54 }
 0x408   :  { %v290_v49 = vmul.f32 %v289_v46, %v270_v21  ;;  %v326_v52 = vmul.f32 %v325_v48, %v310_v35  ;;  %v315_v56 = vmul.f32 %v314_v50, %v310_v35 }
 0x409   :  { %v279_v0 = vmul.f32 %v278_v58, %v270_v21 }
 0x40a   :  { %v291_v53 = vadd.f32 1.0, %v290_v49  ;;  %v327_v55 = vadd.f32 0.112945676, %v326_v52  ;;  %v316_v60 = vadd.f32 0.05243302, %v315_v56 }
 0x40b   :  { %v280_v6 = vadd.f32 1.1283791, %v279_v0 }
 0x40c   :  { %847 = vrcp.f32 %v291_v53  ;;  %v328_v57 = vmul.f32 %v327_v55, %v310_v35  ;;  %v317_v3 = vmul.f32 %v316_v60, %v310_v35  ;;  %v303_v5 = vand.u32 2147483648, %v291_v53 }
 0x40d   :  { %v301_v8 = vand.u32 2147483647, %v291_v53  ;;  %vm297_vm11 = vweird.f32 %v291_v53  ;;  %v281_v13 = vmul.f32 %v280_v6, %v1051_v17 }
 0x40e   :  { %v329_v59 = vadd.f32 0.4994258, %v328_v57  ;;  %v318_v9 = vadd.f32 0.18741608, %v317_v3  ;;  %v304_v11 = vor.u32 1.1754944e-38, %v303_v5 }
 0x40f   :  { %vm302_vm13 = vcmp.eq.f32.partialorder %v301_v8, 8.507059e+37 }
 0x410   :  { %v330_v61 = vmul.f32 %v329_v59, %v310_v35  ;;  %v319_v18 = vmul.f32 %v318_v9, %v310_v35 }
 0x412   :  { %v848_v63 = vpop.eup %847  ;;  %v331_v2 = vadd.f32 1.0, %v330_v61  ;;  %v320_v24 = vadd.f32 1.1283791, %v319_v18 }
 0x413   :  { %v293_v1 = vmul.f32 %v848_v63, %v291_v53  ;;  %vm298_vm10 = vweird.f32 %v848_v63 }
 0x414   :  { %849 = vrcp.f32 %v331_v2  ;;  %vm299_vm12 = vmor %vm297_vm11, %vm298_vm10  ;;  %v343_v23 = vand.u32 2147483648, %v331_v2  ;;  %v341_v27 = vand.u32 2147483647, %v331_v2  ;;  %vm337_vm15 = vweird.f32 %v331_v2 }
 0x415   :  { %v294_v4 = vsub.f32 1.0, %v293_v1  ;;  %v321_v33 = vmul.f32 %v320_v24, %v1058_v28 }
 0x416   :  { %v344_v17 = vor.u32 1.1754944e-38, %v343_v23  ;;  %vm342_vm2 = vcmp.eq.f32.partialorder %v341_v27, 8.507059e+37 }
 0x417   :  { %v295_v7 = vmul.f32 %v848_v63, %v294_v4 }
 0x419   :  { %v296_v10 = vadd.f32 %v848_v63, %v295_v7 }
 0x41a   :  { %v850_v12 = vpop.eup %849 }
 0x41b   :  { %v300_v14 = vsel %vm299_vm12, %v848_v63, %v296_v10  ;;  %v333_v19 = vmul.f32 %v850_v12, %v331_v2  ;;  %vm338_vm14 = vweird.f32 %v850_v12 }
 0x41c   :  { %v305_v16 = vsel %vm302_vm13, %v304_v11, %v300_v14  ;;  %vm339_vm1 = vmor %vm337_vm15, %vm338_vm14 }
 0x41d   :  { %v306_v20 = vmul.f32 %v305_v16, %v281_v13  ;;  %v334_v21 = vsub.f32 1.0, %v333_v19 }
 0x41f   :  { %v790_v22 = vclamps-f32 %v306_v20, 1.0  ;;  %v335_v26 = vmul.f32 %v850_v12, %v334_v21 }
 0x421   :  { %v349_v30 = vadd.f32 1.0, %v790_v22  ;;  %v336_v31 = vadd.f32 %v850_v12, %v335_v26 }
 0x423   :  { %v1064_v32 = vmul.f32 %v349_v30, %v265_v29  ;;  %v340_v35 = vsel %vm339_vm1, %v850_v12, %v336_v31 }
 0x424   :  { %v345_v36 = vsel %vm342_vm2, %v344_v17, %v340_v35  ;;  %vm685_vm2 = vcmask 523264  }
 0x425   :  { %806 = vmatmul.msk.f32.vlgmr.msrb.gmra.mxu2 %vm109_vm0, %v1064_v32  ;;  %v346_v37 = vmul.f32 %v345_v36, %v321_v33 }
 0x427   :  { %v791_v38 = vclamps-f32 %v346_v37, 1.0 }
 0x429   :  { %v350_v15 = vadd.f32 1.0, %v791_v38 }
 0x42b   :  { %v1070_v40 = vmul.f32 %v350_v15, %v266_v39 }
 0x42d   :  { %807 = vmatmul.msk.f32.gmra.mxu2 %vm109_vm0, %v1070_v40 }
 0x44c   :  { %v509_v41 = vpop.xlane.xlu2 %508 }
 0x44d   :  { %v513_v42 = vmul.f32 %v509_v41, %v1026_v34 }
 0x44f   :  { %v515_v28 = vadd.f32 1e-05, %v513_v42 }
 0x451   :  { %851 = vrsqrt.f32 %v515_v28  ;;  %vm523_vm4 = vweird.f32 %v515_v28 }
 0x454   :  { %v512_v43 = vpop.xlane.xlu2 %511 }
 0x455   :  { %v514_v44 = vmul.f32 %v512_v43, %v1026_v34 }
 0x457   :  { %v852_v45 = vpop.eup %851  ;;  %v516_v46 = vadd.f32 1e-05, %v514_v44 }
 0x458   :  { %v518_v47 = vmul.f32 %v852_v45, %v515_v28  ;;  %vm524_vm3 = vweird.f32 %v852_v45 }
 0x459   :  { %853 = vrsqrt.f32 %v516_v46  ;;  %vm525_vm5 = vmor %vm523_vm4, %vm524_vm3  ;;  %vm533_vm7 = vweird.f32 %v516_v46 }
 0x45a   :  { %v519_v48 = vmul.f32 %v852_v45, %v518_v47 }
 0x45c   :  { %v520_v25 = vmul.f32 0.5, %v519_v48 }
 0x45e   :  { %v521_v49 = vsub.f32 1.5, %v520_v25 }
 0x45f   :  { %v854_v50 = vpop.eup %853 }
 0x460   :  { %v522_v52 = vmul.f32 %v852_v45, %v521_v49  ;;  %v528_v53 = vmul.f32 %v854_v50, %v516_v46  ;;  %vm534_vm6 = vweird.f32 %v854_v50 }
 0x461   :  { %vm535_vm8 = vmor %vm533_vm7, %vm534_vm6 }
 0x462   :  { %v526_v54 = vsel %vm525_vm5, %v852_v45, %v522_v52  ;;  %v529_v55 = vmul.f32 %v854_v50, %v528_v53 }
 0x463   :  { %v1077_v56 = vmul.f32 %v526_v54, %v1035_v51 }
 0x464   :  { %v530_v57 = vmul.f32 0.5, %v529_v55 }
 0x465   :  { %v1080_v34 = vmul.f32 0.70710677, %v1077_v56 }
 0x466   :  { %v531_v58 = vsub.f32 1.5, %v530_v57 }
 0x467   :  { %v543_v59 = vmul.f32 %v1080_v34, %v1080_v34 }
 0x468   :  { %v532_v60 = vmul.f32 %v854_v50, %v531_v58 }
 0x469   :  { %v544_v61 = vmin.f32 %v543_v59, 16.0 }
 0x46a   :  { %v536_v63 = vsel %vm535_vm8, %v854_v50, %v532_v60 }
 0x46b   :  { %v545_v0 = vmul.f32 2.1237322e-06, %v544_v61  ;;  %v556_v1 = vmul.f32 3.8918573e-05, %v544_v61  ;;  %v1085_v2 = vmul.f32 %v536_v63, %v1042_v62 }
 0x46d   :  { %v546_v51 = vadd.f32 0.00028619796, %v545_v0  ;;  %v557_v3 = vadd.f32 0.001143296, %v556_v1  ;;  %v1088_v4 = vmul.f32 0.70710677, %v1085_v2 }
 0x46f   :  { %v547_v5 = vmul.f32 %v546_v51, %v544_v61  ;;  %v558_v6 = vmul.f32 %v557_v3, %v544_v61  ;;  %v583_v7 = vmul.f32 %v1088_v4, %v1088_v4  ;;  %v539_v3 = vmul.f32 0.5, %v1077_v56 }
 0x471   :  { %v559_v8 = vadd.f32 0.014752088, %v558_v6  ;;  %v548_v9 = vadd.f32 0.0036580483, %v547_v5  ;;  %v584_v10 = vmin.f32 %v583_v7, 16.0 }
 0x473   :  { %v560_v11 = vmul.f32 %v559_v8, %v544_v61  ;;  %v585_v12 = vmul.f32 2.1237322e-06, %v584_v10  ;;  %v596_v13 = vmul.f32 3.8918573e-05, %v584_v10  ;;  %v549_v16 = vmul.f32 %v548_v9, %v544_v61 }
 0x475   :  { %v561_v14 = vadd.f32 0.112945676, %v560_v11  ;;  %v586_v62 = vadd.f32 0.00028619796, %v585_v12  ;;  %v597_v18 = vadd.f32 0.001143296, %v596_v13 }
 0x476   :  { %v550_v23 = vadd.f32 0.05243302, %v549_v16  ;;  %v540_v13 = vmul.f32 0.5, %v1085_v2  ;;  %v839_v16 = vld [vmem:[#allocation6 + $0xd8] ss:$0 sm:$0xff] }
 0x477   :  { %v562_v19 = vmul.f32 %v561_v14, %v544_v61  ;;  %v587_v20 = vmul.f32 %v586_v62, %v584_v10  ;;  %v598_v21 = vmul.f32 %v597_v18, %v584_v10 }
 0x478   :  { %v551_v31 = vmul.f32 %v550_v23, %v544_v61 }
 0x479   :  { %v563_v22 = vadd.f32 0.4994258, %v562_v19  ;;  %v599_v24 = vadd.f32 0.014752088, %v598_v21  ;;  %v588_v27 = vadd.f32 0.0036580483, %v587_v20 }
 0x47a   :  { %v552_v36 = vadd.f32 0.18741608, %v551_v31 }
 0x47b   :  { %v564_v26 = vmul.f32 %v563_v22, %v544_v61  ;;  %v600_v29 = vmul.f32 %v599_v24, %v584_v10  ;;  %v589_v33 = vmul.f32 %v588_v27, %v584_v10 }
 0x47c   :  { %v553_v41 = vmul.f32 %v552_v36, %v544_v61 }
 0x47d   :  { %v565_v30 = vadd.f32 1.0, %v564_v26  ;;  %v601_v17 = vadd.f32 0.112945676, %v600_v29  ;;  %v590_v38 = vadd.f32 0.05243302, %v589_v33 }
 0x47e   :  { %v554_v46 = vadd.f32 1.1283791, %v553_v41 }
 0x47f   :  { %855 = vrcp.f32 %v565_v30  ;;  %v602_v35 = vmul.f32 %v601_v17, %v584_v10  ;;  %v591_v43 = vmul.f32 %v590_v38, %v584_v10  ;;  %v577_v45 = vand.u32 2147483648, %v565_v30 }
 0x480   :  { %v575_v48 = vand.u32 2147483647, %v565_v30  ;;  %vm571_vm10 = vweird.f32 %v565_v30  ;;  %v555_v53 = vmul.f32 %v554_v46, %v1080_v34 }
 0x481   :  { %v603_v37 = vadd.f32 0.4994258, %v602_v35  ;;  %v592_v25 = vadd.f32 0.18741608, %v591_v43  ;;  %v578_v50 = vor.u32 1.1754944e-38, %v577_v45 }
 0x482   :  { %vm576_vm12 = vcmp.eq.f32.partialorder %v575_v48, 8.507059e+37 }
 0x483   :  { %v604_v39 = vmul.f32 %v603_v37, %v584_v10  ;;  %v593_v57 = vmul.f32 %v592_v25, %v584_v10 }
 0x485   :  { %v856_v15 = vpop.eup %855  ;;  %v605_v28 = vadd.f32 1.0, %v604_v39  ;;  %v594_v0 = vadd.f32 1.1283791, %v593_v57 }
 0x486   :  { %v567_v42 = vmul.f32 %v856_v15, %v565_v30  ;;  %vm572_vm9 = vweird.f32 %v856_v15 }
 0x487   :  { %857 = vrcp.f32 %v605_v28  ;;  %vm573_vm11 = vmor %vm571_vm10, %vm572_vm9  ;;  %v617_v63 = vand.u32 2147483648, %v605_v28  ;;  %v615_v51 = vand.u32 2147483647, %v605_v28  ;;  %vm611_vm14 = vweird.f32 %v605_v28 }
 0x488   :  { %v568_v44 = vsub.f32 1.0, %v567_v42  ;;  %v595_v8 = vmul.f32 %v594_v0, %v1088_v4  ;;  %v840_v4 = vld [vmem:[#allocation6 + $0xe0] ss:$0 sm:$0xff] }
 0x489   :  { %v618_v34 = vor.u32 1.1754944e-38, %v617_v63  ;;  %vm616_vm1 = vcmp.eq.f32.partialorder %v615_v51, 8.507059e+37 }
 0x48a   :  { %v569_v47 = vmul.f32 %v856_v15, %v568_v44 }
 0x48c   :  { %v570_v49 = vadd.f32 %v856_v15, %v569_v47 }
 0x48d   :  { %v858_v52 = vpop.eup %857 }
 0x48e   :  { %v574_v54 = vsel %vm573_vm11, %v856_v15, %v570_v49  ;;  %v607_v58 = vmul.f32 %v858_v52, %v605_v28  ;;  %vm612_vm13 = vweird.f32 %v858_v52  ;;  %v698_v15 = vstv %s810_s8 }
 0x48f   :  { %v579_v55 = vsel %vm576_vm12, %v578_v50, %v574_v54  ;;  %vm613_vm15 = vmor %vm611_vm14, %vm612_vm13 }
 0x490   :  { %v580_v59 = vmul.f32 %v579_v55, %v555_v53  ;;  %v608_v60 = vsub.f32 1.0, %v607_v58 }
 0x492   :  { %v804_v61 = vclamps-f32 %v580_v59, 1.0  ;;  %v609_v1 = vmul.f32 %v858_v52, %v608_v60 }
 0x494   :  { %v623_v5 = vadd.f32 1.0, %v804_v61  ;;  %v610_v6 = vadd.f32 %v858_v52, %v609_v1 }
 0x496   :  { %v1094_v7 = vmul.f32 %v623_v5, %v539_v3  ;;  %v614_v9 = vsel %vm613_vm15, %v858_v52, %v610_v6 }
 0x497   :  { %v619_v10 = vsel %vm616_vm1, %v618_v34, %v614_v9 }
 0x498   :  { %808 = vmatmul.msk.f32.gmra.mxu2 %vm109_vm0, %v1094_v7  ;;  %v620_v11 = vmul.f32 %v619_v10, %v595_v8 }
 0x49a   :  { %v805_v12 = vclamps-f32 %v620_v11, 1.0 }
 0x49c   :  { %v624_v56 = vadd.f32 1.0, %v805_v12 }
 0x49e   :  { %v1100_v14 = vmul.f32 %v624_v56, %v540_v13 }
 0x4a0   :  { %809 = vmatmul.msk.f32.gmra.mxu2 %vm109_vm0, %v1100_v14 }
 0x4a8   :  { %v662_v62 = vpop.f32.mrf.mxu2 }
 0x4a9   :  { %v663_v18 = vadd.f32 %v839_v16, %v662_v62 }
 0x4ab   :  { %859 = vtanh.f32 %v663_v18 }
 0x4b0   :  { %v665_v20 = vpop.f32.mrf.mxu2 }
 0x4b1   :  { %v860_v19 = vpop.eup %859  ;;  %v666_v21 = vadd.f32 %v839_v16, %v665_v20 }
 0x4b2   :  { %v681_v22 = vmul.f32 %v860_v19, %v840_v4 }
 0x4b3   :  { %861 = vtanh.f32 %v666_v21 }
 0x4b4   :  { %v686_v23 = vsel %vm685_vm2, %v681_v22, 0.0 }
 0x4b5   :  { %687 = vadd.xlane.f32.xlu2 %v686_v23 }
 0x4b9   :  { %v862_v2 = vpop.eup %861 }
 0x4ba   :  { %v682_v24 = vmul.f32 %v862_v2, %v840_v4 }
 0x4bc   :  { %v689_v26 = vsel %vm685_vm2, %v682_v24, 0.0 }
 0x4bd   :  { %690 = vadd.xlane.f32.xlu1 %v689_v26 }
 0x51b   :  { %v668_v27 = vpop.f32.mrf.mxu2 }
 0x51c   :  { %v669_v29 = vadd.f32 %v839_v16, %v668_v27 }
 0x51e   :  { %863 = vtanh.f32 %v669_v29 }
 0x523   :  { %v671_v31 = vpop.f32.mrf.mxu2 }
 0x524   :  { %v864_v30 = vpop.eup %863  ;;  %v672_v17 = vadd.f32 %v839_v16, %v671_v31 }
 0x525   :  { %v683_v33 = vmul.f32 %v864_v30, %v840_v4 }
 0x526   :  { %865 = vtanh.f32 %v672_v17 }
 0x527   :  { %v692_v35 = vsel %vm685_vm2, %v683_v33, 0.0 }
 0x528   :  { %693 = vadd.xlane.f32.xlu2 %v692_v35  ;;  %v688_v39 = vpop.xlane.xlu2 %687 }
 0x529   :  { %v699_v42 = vadd.f32 %v698_v15, %v688_v39 }
 0x52c   :  { %v866_v36 = vpop.eup %865 }
 0x52d   :  { %v684_v37 = vmul.f32 %v866_v36, %v840_v4 }
 0x52f   :  { %v695_v38 = vsel %vm685_vm2, %v684_v37, 0.0 }
 0x530   :  { %696 = vadd.xlane.f32.xlu0 %v695_v38  ;;  %v691_v46 = vpop.xlane.xlu1 %690 }
 0x531   :  { %v700_v49 = vadd.f32 %v698_v15, %v691_v46 }
 0x59b   :  { %v694_v41 = vpop.xlane.xlu2 %693 }
 0x59c   :  { %v701_v28 = vadd.f32 %v698_v15, %v694_v41 }
 0x59e   :  { %v703_v43 = vmax.f32 %v699_v42, %v701_v28 }
 0x5a0   :  { %v705_v44 = vsub.f32 %v699_v42, %v703_v43  ;;  %v711_v45 = vsub.f32 %v701_v28, %v703_v43 }
 0x5a2   :  { %v707_v47 = vmul.f32 1.442695, %v705_v44  ;;  %v713_v48 = vmul.f32 1.442695, %v711_v45 }
 0x5a3   :  { %v697_v25 = vpop.xlane.xlu0 %696 }
 0x5a4   :  { %867 = vpow2.f32 %v707_v47  ;;  %v702_v50 = vadd.f32 %v698_v15, %v697_v25 }
 0x5a5   :  { %869 = vpow2.f32 %v713_v48 }
 0x5a6   :  { %v704_v52 = vmax.f32 %v700_v49, %v702_v50 }
 0x5a8   :  { %v706_v53 = vsub.f32 %v700_v49, %v704_v52  ;;  %v712_v54 = vsub.f32 %v702_v50, %v704_v52 }
 0x5aa   :  { %v868_v55 = vpop.eup %867  ;;  %v709_v58 = vmul.f32 1.442695, %v706_v53  ;;  %v715_v59 = vmul.f32 1.442695, %v712_v54 }
 0x5ab   :  { %v870_v57 = vpop.eup %869 }
 0x5ac   :  { %v717_v60 = vadd.f32 %v870_v57, %v868_v55  ;;  %871 = vpow2.f32 %v709_v58 }
 0x5ae   :  { %873 = vrcp.f32 %v717_v60  ;;  %v730_v5 = vand.u32 2147483648, %v717_v60  ;;  %v728_v34 = vand.u32 2147483647, %v717_v60  ;;  %vm724_vm4 = vweird.f32 %v717_v60 }
 0x5af   :  { %875 = vpow2.f32 %v715_v59 }
 0x5b0   :  { %v731_v9 = vor.u32 1.1754944e-38, %v730_v5  ;;  %vm729_vm6 = vcmp.eq.f32.partialorder %v728_v34, 8.507059e+37 }
 0x5b2   :  { %v872_v61 = vpop.eup %871 }
 0x5b4   :  { %v874_v63 = vpop.eup %873 }
 0x5b5   :  { %v876_v0 = vpop.eup %875  ;;  %v720_v1 = vmul.f32 %v874_v63, %v717_v60  ;;  %vm725_vm3 = vweird.f32 %v874_v63 }
 0x5b6   :  { %v718_v51 = vadd.f32 %v876_v0, %v872_v61  ;;  %vm726_vm5 = vmor %vm724_vm4, %vm725_vm3 }
 0x5b7   :  { %v721_v3 = vsub.f32 1.0, %v720_v1 }
 0x5b8   :  { %877 = vrcp.f32 %v718_v51  ;;  %v745_v19 = vand.u32 2147483648, %v718_v51  ;;  %v743_v21 = vand.u32 2147483647, %v718_v51  ;;  %vm739_vm8 = vweird.f32 %v718_v51 }
 0x5b9   :  { %v722_v6 = vmul.f32 %v874_v63, %v721_v3 }
 0x5ba   :  { %v746_v2 = vor.u32 1.1754944e-38, %v745_v19  ;;  %vm744_vm10 = vcmp.eq.f32.partialorder %v743_v21, 8.507059e+37 }
 0x5bb   :  { %v723_v8 = vadd.f32 %v874_v63, %v722_v6 }
 0x5bd   :  { %v727_v10 = vsel %vm726_vm5, %v874_v63, %v723_v8 }
 0x5be   :  { %v878_v11 = vpop.eup %877  ;;  %v732_v12 = vsel %vm729_vm6, %v731_v9, %v727_v10 }
 0x5bf   :  { %v735_v13 = vmul.f32 %v878_v11, %v718_v51  ;;  %v749_v56 = vmul.f32 %v868_v55, %v732_v12  ;;  %v753_v16 = vmul.f32 %v870_v57, %v732_v12  ;;  %vm740_vm7 = vweird.f32 %v878_v11 }
 0x5c0   :  { %vm741_vm9 = vmor %vm739_vm8, %vm740_vm7 }
 0x5c1   :  { %v736_v62 = vsub.f32 1.0, %v735_v13  ;;  %v751_v18 = vmul.f32 %v749_v56, %v1064_v32  ;;  %v755_v4 = vmul.f32 %v753_v16, %v1094_v7 }
 0x5c3   :  { %v737_v20 = vmul.f32 %v878_v11, %v736_v62  ;;  %v757_v22 = vadd.f32 %v755_v4, %v751_v18 }
 0x5c5   :  { %v738_v23 = vadd.f32 %v878_v11, %v737_v20  ;;  %759 = vst.msk [vmem:[#allocation9] sm:$0xff] %vm109_vm0, %v757_v22 }
 0x5c7   :  { %v742_v24 = vsel %vm741_vm9, %v878_v11, %v738_v23 }
 0x5c8   :  { %v747_v26 = vsel %vm744_vm10, %v746_v2, %v742_v24 }
 0x5c9   :  { %v750_v27 = vmul.f32 %v872_v61, %v747_v26  ;;  %v754_v29 = vmul.f32 %v876_v0, %v747_v26 }
 0x5cb   :  { %v752_v32 = vmul.f32 %v750_v27, %v1070_v40  ;;  %v756_v7 = vmul.f32 %v754_v29, %v1100_v14 }
 0x5cd   :  { %v758_v30 = vadd.f32 %v756_v7, %v752_v32 }
 0x5cf   :  { %760 = vst.msk [vmem:[#allocation9 + $0x8] sm:$0xff] %vm109_vm0, %v758_v30 }
 0x5d0   :  { %773 = dma.vmem_to_hbm [thread:$0]  %s766_s10, 256, %s768_s13, [#allocation4], %s973_s21, %s973_s21, %s974_s22  }
 0x5d1   :  { %969 = dma.done.wait [#allocation4], 256  }
 0x5d2   :  { %970 = vsyncadd [#allocation4], 4294967040 }
 0x5d3   :  { %778 = vsyncpa [#allocation3], 1 }
 0x5d4   :  { %779 = vsyncpa [#allocation8], 1 }
 0x5d5   :  { %780 = vsyncpa [#allocation4], 1 }
 0x5d6   :  { %781 = vsyncpa [#allocation5], 1 }

// kernel: tpu_custom_call.1
= control target key start
LH: loop header
LB: loop body
LE: loop exit
PB: predicated region body
PF: predicated region fallthrough
CT: control target
= control target key end

     0   :  { %8 = vsyncpa [#allocation5], 0  ;;  %s1104_s0 = inlined_call_operand.hbm [shape: f32[10], index: 0, kind: input, shape index: {}]   ;;  %s1105_s1 = inlined_call_operand.hbm [shape: f32[232,128], index: 1, kind: input, shape index: {}]   ;;  %s1106_s2 = inlined_call_operand.hbm [shape: f32[96,128], index: 2, kind: input, shape index: {}]   ;;  %s1107_s3 = inlined_call_operand.hbm [shape: f32[16,32], index: 3, kind: output, shape index: {}]  }
   0x1   :  { %9 = vsyncpa [#allocation3], 0 }
   0x2   :  { %10 = vsyncpa [#allocation8], 0 }
   0x3   :  { %11 = vsyncpa [#allocation4], 0  ;;  %s17_s14 = sshll.u32 %s1104_s0, 4  ;;  %s25_s17 = sshll.u32 %s1105_s1, 4  ;;  %s18_s14 = int_to_ptr.hbm [resolvable:$true] %s17_s14  ;;  %s26_s17 = int_to_ptr.hbm [resolvable:$true] %s25_s17 }
   0x4   :  { %s959_s18 = smov [#allocation2]   ;;  %s960_s19 = smov [#allocation6]  }
   0x5   :  { %20 = dma.hbm_to_smem %s18_s14, 16, %s959_s18, [#allocation5]  }
   0x6   :  { %s27_s20 = sshll.u32 %s960_s19, 4  ;;  %s961_s21 = smov 128   ;;  %s28_s20 = int_to_ptr.vmem [resolvable:$true] %s27_s20 }
   0x7   :  { %s962_s22 = smov 8   ;;  %s38_s0 = sshll.u32 %s1106_s2, 4  ;;  %s39_s0 = int_to_ptr.hbm [resolvable:$true] %s38_s0 }
   0x8   :  { %33 = dma.hbm_to_vmem [thread:$0]  %s26_s17, 3712, %s28_s20, [#allocation3], %s961_s21, %s961_s21, %s962_s22  }
   0x9   :  { %s963_s25 = smov [#allocation7]  }
   0xa   :  { %s40_s26 = sshll.u32 %s963_s25, 4  ;;  %s41_s26 = int_to_ptr.vmem [resolvable:$true] %s40_s26 }
   0xb   :  { %46 = dma.hbm_to_vmem [thread:$0]  %s39_s0, 1536, %s41_s26, [#allocation8], %s961_s21, %s961_s21, %s962_s22  }
   0xc   :  { %951 = dma.done.wait [#allocation5], 16  }
   0xd   :  { %952 = vsyncadd [#allocation5], 4294967280 }
   0xe   :  { %953 = dma.done.wait [#allocation3], 3712  }
   0xf   :  { %954 = vsyncadd [#allocation3], 4294963584 }
  0x10   :  { %955 = dma.done.wait [#allocation8], 1536  }
  0x11   :  { %956 = vsyncadd [#allocation8], 4294965760 }
  0x12   :  { %59 = sfence }
  0x13   :  { %v77_v0 = vld [vmem:[#allocation6 + $0x78] sm:$0xff]  ;;  %v76_v1 = vld [vmem:[#allocation6 + $0x70] sm:$0xff]  ;;  %v75_v2 = vld [vmem:[#allocation6 + $0x68] sm:$0xff]  ;;  %vm109_vm0 = vcmask 261120   ;;  %s782_s1 = sld [smem:[#allocation2 + $0x7]]  ;;  %s964_s30 = smov 96  }
  0x14   :  { %80 = vmatpush.msra.mxu0 %v77_v0  ;;  %v74_v3 = vld [vmem:[#allocation6 + $0x60] sm:$0xff]  ;;  %v73_v4 = vld [vmem:[#allocation6 + $0x58] sm:$0xff]  ;;  %v72_v5 = vld [vmem:[#allocation6 + $0x50] sm:$0xff]  ;;  %s774_s2 = sld [smem:[#allocation2 + $0x3]]  ;;  %vm145_vm1 = vcmask 130048   ;;  %vm457_vm2 = vcmask 392192  }
  0x15   :  { %v106_v6 = vld [vmem:[#allocation6 + $0xa8] sm:$0xff]  ;;  %v105_v7 = vld [vmem:[#allocation6 + $0xa0] sm:$0xff]  ;;  %v69_v10 = vld [vmem:[#allocation6 + $0x38] sm:$0xff]  ;;  %s141_s27 = sld [smem:[#allocation2]]  ;;  %s966_s9 = smov [#allocation9]  }
  0x16   :  { %81 = vmatpush.msra.mxu0 %v76_v1  ;;  %128 = vmatpush.msra.mxu1 %v106_v6  ;;  %v71_v8 = vld [vmem:[#allocation6 + $0x48] sm:$0xff]  ;;  %v70_v9 = vld [vmem:[#allocation6 + $0x40] sm:$0xff]  ;;  %v68_v11 = vld [vmem:[#allocation6 + $0x30] sm:$0xff]  ;;  %s771_s28 = sld [smem:[#allocation2 + $0x2]]  ;;  %s749_s10 = sshll.u32 %s966_s9, 4  ;;  %s750_s10 = int_to_ptr.vmem [resolvable:$true] %s749_s10 }
  0x17   :  { %791 = vmatpush.msra.mxu3 %v106_v6  ;;  %v67_v12 = vld [vmem:[#allocation6 + $0x28] sm:$0xff]  ;;  %v66_v13 = vld [vmem:[#allocation6 + $0x20] sm:$0xff]  ;;  %v65_v14 = vld [vmem:[#allocation6 + $0x18] sm:$0xff]  ;;  %s778_s29 = sld [smem:[#allocation2 + $0x5]]  ;;  %s751_s13 = sshll.u32 %s1107_s3, 4  ;;  %s752_s13 = int_to_ptr.hbm [resolvable:$true] %s751_s13 }
  0x18   :  { %82 = vmatpush.msra.mxu0 %v75_v2  ;;  %129 = vmatpush.msra.mxu1 %v105_v7  ;;  %v64_v15 = vld [vmem:[#allocation6 + $0x10] sm:$0xff]  ;;  %v63_v16 = vld [vmem:[#allocation6 + $0x8] sm:$0xff]  ;;  %v62_v17 = vld [vmem:[#allocation6] sm:$0xff]  ;;  %s770_s4 = sld [smem:[#allocation2 + $0x1]] }
  0x19   :  { %792 = vmatpush.msra.mxu3 %v105_v7  ;;  %v60_v18 = vld [vmem:[#allocation7] sm:$0xff]  ;;  %v61_v19 = vld [vmem:[#allocation7 + $0x8] sm:$0xff]  ;;  %v104_v20 = vld [vmem:[#allocation6 + $0x98] sm:$0xff]  ;;  %v442_v31 = vstv %s782_s1  ;;  %s777_s5 = sld [smem:[#allocation2 + $0x4]] }
  0x1a   :  { %83 = vmatpush.msra.mxu0 %v74_v3  ;;  %130 = vmatpush.msra.mxu1 %v104_v20  ;;  %v103_v21 = vld [vmem:[#allocation6 + $0x90] sm:$0xff]  ;;  %v78_v22 = vld [vmem:[#allocation6 + $0x80] sm:$0xff]  ;;  %v79_v25 = vld [vmem:[#allocation6 + $0x88] sm:$0xff]  ;;  %v348_v32 = vstv %s774_s2  ;;  %s783_s6 = sld [smem:[#allocation2 + $0x8]] }
  0x1b   :  { %793 = vmatpush.msra.mxu3 %v104_v20  ;;  %v818_v28 = vld [vmem:[#allocation6 + $0xb0] ss:$0 sm:$0xff]  ;;  %v142_v35 = vstv %s141_s27  ;;  %v139_v51 = vld [vmem:[#allocation7 + $0x10] sm:$0xff]  ;;  %v140_v52 = vld [vmem:[#allocation7 + $0x18] sm:$0xff]  ;;  %s781_s7 = sld [smem:[#allocation2 + $0x6]] }
  0x1c   :  { %84 = vmatpush.msra.mxu0 %v73_v4  ;;  %131 = vmatpush.msra.mxu1 %v103_v21  ;;  %v182_v36 = vstv %s771_s28  ;;  %v345_v56 = vld [vmem:[#allocation7 + $0x30] sm:$0xff]  ;;  %v346_v60 = vld [vmem:[#allocation7 + $0x38] sm:$0xff]  ;;  %v175_v2 = vld [vmem:[#allocation7 + $0x20] sm:$0xff]  ;;  %s790_s8 = sld [smem:[#allocation2 + $0x9]] }
  0x1d   :  { %794 = vmatpush.msra.mxu3 %v103_v21  ;;  %v395_v47 = vstv %s778_s29  ;;  %v176_v3 = vld [vmem:[#allocation7 + $0x28] sm:$0xff] }
  0x1e   :  { %85 = vmatpush.msra.mxu0 %v72_v5  ;;  %v178_v62 = vstv %s770_s4 }
  0x1f   :  { %v391_v5 = vstv %s777_s5 }
  0x20   :  { %86 = vmatpush.msra.mxu0 %v71_v8  ;;  %v446_v6 = vstv %s783_s6 }
  0x22   :  { %87 = vmatpush.msra.mxu0 %v70_v9 }
  0x24   :  { %88 = vmatpush.msra.mxu0 %v69_v10 }
  0x26   :  { %89 = vmatpush.msra.mxu0 %v68_v11 }
  0x28   :  { %90 = vmatpush.msra.mxu0 %v67_v12 }
  0x2a   :  { %91 = vmatpush.msra.mxu0 %v66_v13  ;;  %v388_v13 = vld [vmem:[#allocation7 + $0x40] sm:$0xff] }
  0x2c   :  { %92 = vmatpush.msra.mxu0 %v65_v14 }
  0x2e   :  { %93 = vmatpush.msra.mxu0 %v64_v15 }
  0x30   :  { %94 = vmatpush.msra.mxu0 %v63_v16  ;;  %v389_v16 = vld [vmem:[#allocation7 + $0x48] sm:$0xff] }
  0x32   :  { %95 = vmatpush.msra.mxu0 %v62_v17 }
  0x33   :  { %96 = vmatmul.f32.vlgmr.msra.gmra.mxu0 %v60_v18 }
  0x3b   :  { %99 = vmatmul.f32.gmra.mxu0 %v61_v19 }
  0xb0   :  { %v97_v23 = vpop.f32.mrf.mxu0 }
  0xb1   :  { %v98_v24 = vadd.f32 %v97_v23, %v78_v22  ;;  %v438_v22 = vstv %s781_s7 }
  0xb3   :  { %766 = vmatmul.msk.f32.vlgmr.msra.gmra.mxu1 %vm109_vm0, %v98_v24 }
  0xb8   :  { %v100_v26 = vpop.f32.mrf.mxu0 }
  0xb9   :  { %v101_v27 = vadd.f32 %v100_v26, %v79_v25  ;;  %v435_v26 = vld [vmem:[#allocation7 + $0x50] sm:$0xff] }
  0xbb   :  { %767 = vmatmul.msk.f32.vlgmr.msra.gmra.mxu3 %vm109_vm0, %v101_v27  ;;  %v436_v27 = vld [vmem:[#allocation7 + $0x58] sm:$0xff] }
 0x130   :  { %v133_v29 = vpop.f32.mrf.mxu1 }
 0x131   :  { %v134_v30 = vadd.f32 %v818_v28, %v133_v29 }
 0x133   :  { %v443_v37 = vmul.f32 %v442_v31, %v134_v30  ;;  %v349_v38 = vmul.f32 %v348_v32, %v134_v30  ;;  %v143_v45 = vmul.f32 %v142_v35, %v134_v30  ;;  %v183_v46 = vmul.f32 %v182_v36, %v134_v30 }
 0x134   :  { %v396_v49 = vmul.f32 %v395_v47, %v134_v30 }
 0x13e   :  { %v136_v33 = vpop.f32.mrf.mxu3 }
 0x13f   :  { %v137_v34 = vadd.f32 %v818_v28, %v136_v33  ;;  %v965_v28 = vmov 32.0  }
 0x140   :  { %821 = vrcp.f32 %v965_v28 }
 0x141   :  { %v144_v39 = vmul.f32 %v142_v35, %v137_v34  ;;  %v184_v40 = vmul.f32 %v182_v36, %v137_v34  ;;  %v444_v41 = vmul.f32 %v442_v31, %v137_v34  ;;  %v350_v42 = vmul.f32 %v348_v32, %v137_v34 }
 0x142   :  { %v397_v48 = vmul.f32 %v395_v47, %v137_v34 }
 0x143   :  { %166 = vmatpush.msrb.mxu1 %v144_v39  ;;  %203 = vmatpush.msrb.mxu3 %v184_v40  ;;  %v813_v43 = vpack.i.bf16 %v443_v37, %v444_v41  ;;  %v803_v44 = vpack.i.bf16 %v349_v38, %v350_v42 }
 0x144   :  { %v808_v50 = vpack.i.bf16 %v396_v49, %v397_v48 }
 0x145   :  { %814 = vrot.lane.b32.xlu1 %v813_v43, %s964_s30  ;;  %804 = vrot.lane.b32.xlu0 %v803_v44, %s964_s30 }
 0x146   :  { %167 = vmatpush.msrb.mxu1 %v143_v45  ;;  %204 = vmatpush.msrb.mxu3 %v183_v46  ;;  %v822_v29 = vpop.eup %821 }
 0x147   :  { %768 = vmatmul.msk.f32.vlgmr.msrb.gmra.mxu1 %vm145_vm1, %v139_v51  ;;  %v221_v30 = vmul.f32 32.0, %v822_v29  ;;  %vm225_vm3 = vweird.f32 %v822_v29 }
 0x149   :  { %v222_v31 = vsub.f32 1.0, %v221_v30 }
 0x14b   :  { %v223_v32 = vmul.f32 %v822_v29, %v222_v31 }
 0x14d   :  { %809 = vrot.lane.b32.xlu0 %v808_v50, %s964_s30  ;;  %v224_v33 = vadd.f32 %v822_v29, %v223_v32 }
 0x14f   :  { %769 = vmatmul.msk.f32.gmra.mxu1 %vm145_vm1, %v140_v52  ;;  %v1014_v34 = vsel %vm225_vm3, %v822_v29, %v224_v33 }
 0x1b7   :  { %v805_v53 = vpop.permute.xlu0 %804  ;;  %v815_v10 = vpop.permute.xlu1 %814 }
 0x1b8   :  { %v806_v54 = vunpack.i.l.bf16 %v805_v53  ;;  %v807_v55 = vunpack.i.h.bf16 %v805_v53  ;;  %v816_v14 = vunpack.i.l.bf16 %v815_v10  ;;  %v817_v15 = vunpack.i.h.bf16 %v815_v10 }
 0x1ba   :  { %379 = vmatpush.msra.mxu2 %v806_v54 }
 0x1bc   :  { %380 = vmatpush.msra.mxu2 %v807_v55 }
 0x1bd   :  { %775 = vmatmul.msk.f32.vlgmr.msra.gmra.mxu2 %vm145_vm1, %v345_v56 }
 0x1bf   :  { %v810_v57 = vpop.permute.xlu0 %809 }
 0x1c0   :  { %v811_v58 = vunpack.i.l.bf16 %v810_v57  ;;  %v812_v59 = vunpack.i.h.bf16 %v810_v57 }
 0x1c2   :  { %424 = vmatpush.msra.mxu1 %v811_v58 }
 0x1c4   :  { %425 = vmatpush.msra.mxu1 %v812_v59  ;;  %v169_v61 = vpop.f32.mrf.mxu1 }
 0x1c5   :  { %776 = vmatmul.msk.f32.gmra.mxu2 %vm145_vm1, %v346_v60  ;;  %v179_v0 = vmul.f32 %v178_v62, %v169_v61 }
 0x1cc   :  { %v172_v63 = vpop.f32.mrf.mxu1 }
 0x1cd   :  { %v180_v1 = vmul.f32 %v178_v62, %v172_v63 }
 0x1cf   :  { %205 = vmatpush.msrb.mxu3 %v180_v1  ;;  %v613_v1 = vld [vmem:[#allocation6 + $0xc8] sm:$0xff] }
 0x1d1   :  { %206 = vmatpush.msrb.mxu3 %v179_v0  ;;  %v614_v0 = vld [vmem:[#allocation6 + $0xd0] sm:$0xff] }
 0x1d2   :  { %772 = vmatmul.msk.f32.vlgmr.msrb.gmra.mxu3 %vm109_vm0, %v175_v2  ;;  %641 = vmatpush.msrb.mxu2 %v614_v0 }
 0x1d4   :  { %642 = vmatpush.msrb.mxu2 %v613_v1 }
 0x1da   :  { %773 = vmatmul.msk.f32.gmra.mxu3 %vm109_vm0, %v176_v3 }
 0x240   :  { %v382_v4 = vpop.f32.mrf.mxu2 }
 0x241   :  { %v392_v11 = vmul.f32 %v391_v5, %v382_v4  ;;  %v447_v12 = vmul.f32 %v446_v6, %v382_v4 }
 0x248   :  { %v385_v7 = vpop.f32.mrf.mxu2 }
 0x249   :  { %v393_v8 = vmul.f32 %v391_v5, %v385_v7  ;;  %v448_v9 = vmul.f32 %v446_v6, %v385_v7  ;;  %v612_v5 = vld [vmem:[#allocation6 + $0xc0] sm:$0xff]  ;;  %v611_v7 = vld [vmem:[#allocation6 + $0xb8] sm:$0xff] }
 0x24a   :  { %643 = vmatpush.msrb.mxu2 %v612_v5 }
 0x24b   :  { %426 = vmatpush.msra.mxu1 %v393_v8  ;;  %474 = vmatpush.msra.mxu3 %v448_v9 }
 0x24c   :  { %644 = vmatpush.msrb.mxu2 %v611_v7 }
 0x24d   :  { %427 = vmatpush.msra.mxu1 %v392_v11  ;;  %475 = vmatpush.msra.mxu3 %v447_v12 }
 0x24e   :  { %779 = vmatmul.msk.f32.vlgmr.msra.gmra.mxu1 %vm109_vm0, %v388_v13 }
 0x24f   :  { %476 = vmatpush.msra.mxu3 %v816_v14 }
 0x251   :  { %477 = vmatpush.msra.mxu3 %v817_v15 }
 0x255   :  { %v208_v17 = vpop.f32.mrf.mxu3 }
 0x256   :  { %780 = vmatmul.msk.f32.gmra.mxu1 %vm109_vm0, %v389_v16  ;;  %v214_v18 = vsel %vm109_vm0, %v208_v17, 0.0 }
 0x257   :  { %215 = vadd.xlane.f32.xlu1 %v214_v18 }
 0x25d   :  { %v211_v19 = vpop.f32.mrf.mxu3 }
 0x25e   :  { %v217_v20 = vsel %vm109_vm0, %v211_v19, 0.0 }
 0x25f   :  { %218 = vadd.xlane.f32.xlu2 %v217_v20 }
 0x2ca   :  { %v216_v35 = vpop.xlane.xlu1 %215 }
 0x2cb   :  { %v429_v21 = vpop.f32.mrf.mxu1  ;;  %v227_v36 = vmul.f32 %v1014_v34, %v216_v35 }
 0x2cc   :  { %v439_v25 = vmul.f32 %v438_v22, %v429_v21 }
 0x2cd   :  { %v229_v38 = vsub.f32 %v208_v17, %v227_v36 }
 0x2cf   :  { %v231_v42 = vmul.f32 %v229_v38, %v229_v38 }
 0x2d1   :  { %v233_v46 = vsel %vm109_vm0, %v231_v42, 0.0 }
 0x2d2   :  { %v219_v40 = vpop.xlane.xlu2 %218 }
 0x2d3   :  { %v432_v23 = vpop.f32.mrf.mxu1  ;;  %v228_v41 = vmul.f32 %v1014_v34, %v219_v40 }
 0x2d4   :  { %v440_v24 = vmul.f32 %v438_v22, %v432_v23 }
 0x2d5   :  { %v230_v44 = vsub.f32 %v211_v19, %v228_v41 }
 0x2d6   :  { %478 = vmatpush.msra.mxu3 %v440_v24 }
 0x2d7   :  { %v232_v47 = vmul.f32 %v230_v44, %v230_v44 }
 0x2d8   :  { %479 = vmatpush.msra.mxu3 %v439_v25 }
 0x2d9   :  { %784 = vmatmul.msk.f32.vlgmr.msra.gmra.mxu3 %vm457_vm2, %v435_v26  ;;  %v236_v48 = vsel %vm109_vm0, %v232_v47, 0.0 }
 0x2e1   :  { %785 = vmatmul.msk.f32.gmra.mxu3 %vm457_vm2, %v436_v27 }
 0x35c   :  { %v481_v37 = vpop.f32.mrf.mxu3 }
 0x35d   :  { %v487_v39 = vsel %vm109_vm0, %v481_v37, 0.0 }
 0x35e   :  { %488 = vadd.xlane.f32.xlu2 %v487_v39 }
 0x364   :  { %v484_v43 = vpop.f32.mrf.mxu3 }
 0x365   :  { %v490_v45 = vsel %vm109_vm0, %v484_v43, 0.0 }
 0x366   :  { %491 = vadd.xlane.f32.xlu0 %v490_v45  ;;  %234 = vadd.xlane.f32.xlu2 %v233_v46 }
 0x36e   :  { %237 = vadd.xlane.f32.xlu2 %v236_v48 }
 0x3d1   :  { %v489_v49 = vpop.xlane.xlu2 %488 }
 0x3d2   :  { %v493_v50 = vmul.f32 %v489_v49, %v1014_v34 }
 0x3d4   :  { %v1023_v51 = vsub.f32 %v481_v37, %v493_v50 }
 0x3d6   :  { %v497_v52 = vmul.f32 %v1023_v51, %v1023_v51 }
 0x3d8   :  { %v499_v53 = vsel %vm109_vm0, %v497_v52, 0.0 }
 0x3d9   :  { %v492_v54 = vpop.xlane.xlu0 %491  ;;  %500 = vadd.xlane.f32.xlu2 %v499_v53  ;;  %v235_v55 = vpop.xlane.xlu2 %234 }
 0x3da   :  { %v494_v56 = vmul.f32 %v492_v54, %v1014_v34  ;;  %v239_v57 = vmul.f32 %v235_v55, %v1014_v34 }
 0x3dc   :  { %v1030_v58 = vsub.f32 %v484_v43, %v494_v56  ;;  %v241_v59 = vadd.f32 1e-05, %v239_v57 }
 0x3de   :  { %823 = vrsqrt.f32 %v241_v59  ;;  %v498_v60 = vmul.f32 %v1030_v58, %v1030_v58  ;;  %vm249_vm5 = vweird.f32 %v241_v59 }
 0x3e0   :  { %v502_v61 = vsel %vm109_vm0, %v498_v60, 0.0 }
 0x3e1   :  { %503 = vadd.xlane.f32.xlu2 %v502_v61  ;;  %v238_v62 = vpop.xlane.xlu2 %237 }
 0x3e2   :  { %v240_v63 = vmul.f32 %v238_v62, %v1014_v34 }
 0x3e4   :  { %v824_v2 = vpop.eup %823  ;;  %v242_v3 = vadd.f32 1e-05, %v240_v63 }
 0x3e5   :  { %v244_v4 = vmul.f32 %v824_v2, %v241_v59  ;;  %vm250_vm4 = vweird.f32 %v824_v2 }
 0x3e6   :  { %825 = vrsqrt.f32 %v242_v3  ;;  %vm251_vm6 = vmor %vm249_vm5, %vm250_vm4  ;;  %vm259_vm8 = vweird.f32 %v242_v3 }
 0x3e7   :  { %v245_v6 = vmul.f32 %v824_v2, %v244_v4 }
 0x3e9   :  { %v246_v8 = vmul.f32 0.5, %v245_v6 }
 0x3eb   :  { %v247_v9 = vsub.f32 1.5, %v246_v8 }
 0x3ec   :  { %v826_v10 = vpop.eup %825 }
 0x3ed   :  { %v248_v11 = vmul.f32 %v824_v2, %v247_v9  ;;  %v254_v12 = vmul.f32 %v826_v10, %v242_v3  ;;  %vm260_vm7 = vweird.f32 %v826_v10 }
 0x3ee   :  { %vm261_vm9 = vmor %vm259_vm8, %vm260_vm7 }
 0x3ef   :  { %v252_v13 = vsel %vm251_vm6, %v824_v2, %v248_v11  ;;  %v255_v14 = vmul.f32 %v826_v10, %v254_v12 }
 0x3f0   :  { %v1036_v15 = vmul.f32 %v252_v13, %v229_v38 }
 0x3f1   :  { %v256_v16 = vmul.f32 0.5, %v255_v14 }
 0x3f2   :  { %v1039_v17 = vmul.f32 0.70710677, %v1036_v15 }
 0x3f3   :  { %v257_v18 = vsub.f32 1.5, %v256_v16 }
 0x3f4   :  { %v269_v19 = vand.u32 2147483647, %v1039_v17  ;;  %vm335_vm3 = vcmp.ge.f32.partialorder %v1039_v17, 0.0 }
 0x3f5   :  { %v258_v20 = vmul.f32 %v826_v10, %v257_v18  ;;  %v265_v18 = vmul.f32 0.5, %v1036_v15 }
 0x3f6   :  { %v271_v21 = vmul.f32 0.3275911, %v269_v19  ;;  %v323_v40 = vsub.f32 0.0, %v269_v19 }
 0x3f7   :  { %v262_v22 = vsel %vm261_vm9, %v826_v10, %v258_v20 }
 0x3f8   :  { %v273_v23 = vadd.f32 1.0, %v271_v21  ;;  %v1042_v24 = vmul.f32 %v262_v22, %v230_v44  ;;  %v325_v47 = vmul.f32 %v323_v40, %v269_v19 }
 0x3fa   :  { %827 = vrcp.f32 %v273_v23  ;;  %v1045_v25 = vmul.f32 0.70710677, %v1042_v24  ;;  %v286_v32 = vand.u32 2147483648, %v273_v23  ;;  %v284_v35 = vand.u32 2147483647, %v273_v23 }
 0x3fb   :  { %vm280_vm11 = vweird.f32 %v273_v23  ;;  %v327_v55 = vmul.f32 1.442695, %v325_v47  ;;  %v266_v17 = vmul.f32 0.5, %v1042_v24 }
 0x3fc   :  { %v270_v26 = vand.u32 2147483647, %v1045_v25  ;;  %v287_v37 = vor.u32 1.1754944e-38, %v286_v32  ;;  %vm285_vm13 = vcmp.eq.f32.partialorder %v284_v35, 8.507059e+37  ;;  %vm336_vm4 = vcmp.ge.f32.partialorder %v1045_v25, 0.0 }
 0x3fe   :  { %v272_v27 = vmul.f32 0.3275911, %v270_v26  ;;  %v324_v60 = vsub.f32 0.0, %v270_v26 }
 0x400   :  { %v828_v28 = vpop.eup %827  ;;  %v274_v30 = vadd.f32 1.0, %v272_v27  ;;  %v326_v1 = vmul.f32 %v324_v60, %v270_v26 }
 0x401   :  { %v276_v29 = vmul.f32 %v828_v28, %v273_v23  ;;  %vm281_vm10 = vweird.f32 %v828_v28 }
 0x402   :  { %829 = vrcp.f32 %v274_v30  ;;  %vm282_vm12 = vmor %vm280_vm11, %vm281_vm10  ;;  %v301_v46 = vand.u32 2147483648, %v274_v30  ;;  %v299_v49 = vand.u32 2147483647, %v274_v30  ;;  %vm295_vm15 = vweird.f32 %v274_v30 }
 0x403   :  { %v277_v31 = vsub.f32 1.0, %v276_v29  ;;  %831 = vpow2.f32 %v327_v55  ;;  %v329_v6 = vmul.f32 1.442695, %v326_v1 }
 0x404   :  { %v302_v54 = vor.u32 1.1754944e-38, %v301_v46  ;;  %vm300_vm2 = vcmp.eq.f32.partialorder %v299_v49, 8.507059e+37 }
 0x405   :  { %v278_v33 = vmul.f32 %v828_v28, %v277_v31  ;;  %833 = vpow2.f32 %v329_v6 }
 0x407   :  { %v279_v36 = vadd.f32 %v828_v28, %v278_v33 }
 0x408   :  { %v830_v38 = vpop.eup %829 }
 0x409   :  { %v283_v39 = vsel %vm282_vm12, %v828_v28, %v279_v36  ;;  %v291_v42 = vmul.f32 %v830_v38, %v274_v30  ;;  %vm296_vm14 = vweird.f32 %v830_v38  ;;  %v832_v7 = vpop.eup %831 }
 0x40a   :  { %v288_v41 = vsel %vm285_vm13, %v287_v37, %v283_v39  ;;  %vm297_vm1 = vmor %vm295_vm15, %vm296_vm14 }
 0x40b   :  { %v305_v43 = vmul.f32 1.0614054, %v288_v41  ;;  %v292_v44 = vsub.f32 1.0, %v291_v42  ;;  %v834_v21 = vpop.eup %833 }
 0x40d   :  { %v307_v45 = vadd.f32 -1.4531521, %v305_v43  ;;  %v293_v48 = vmul.f32 %v830_v38, %v292_v44 }
 0x40f   :  { %v309_v50 = vmul.f32 %v307_v45, %v288_v41  ;;  %v294_v52 = vadd.f32 %v830_v38, %v293_v48 }
 0x411   :  { %v311_v53 = vadd.f32 1.4214138, %v309_v50  ;;  %v298_v56 = vsel %vm297_vm1, %v830_v38, %v294_v52 }
 0x412   :  { %v303_v59 = vsel %vm300_vm2, %v302_v54, %v298_v56 }
 0x413   :  { %v313_v57 = vmul.f32 %v311_v53, %v288_v41  ;;  %v306_v61 = vmul.f32 1.0614054, %v303_v59 }
 0x415   :  { %v315_v62 = vadd.f32 -0.28449672, %v313_v57  ;;  %v308_v63 = vadd.f32 -1.4531521, %v306_v61 }
 0x417   :  { %v317_v0 = vmul.f32 %v315_v62, %v288_v41  ;;  %v310_v2 = vmul.f32 %v308_v63, %v303_v59 }
 0x419   :  { %v319_v3 = vadd.f32 0.2548296, %v317_v0  ;;  %v312_v4 = vadd.f32 1.4214138, %v310_v2 }
 0x41b   :  { %v321_v5 = vmul.f32 %v319_v3, %v288_v41  ;;  %v314_v8 = vmul.f32 %v312_v4, %v303_v59 }
 0x41d   :  { %v331_v9 = vmul.f32 %v832_v7, %v321_v5  ;;  %v316_v10 = vadd.f32 -0.28449672, %v314_v8 }
 0x41f   :  { %v333_v11 = vsub.f32 1.0, %v331_v9  ;;  %v318_v12 = vmul.f32 %v316_v10, %v303_v59 }
 0x421   :  { %v337_v13 = vsub.f32 0.0, %v333_v11  ;;  %v320_v14 = vadd.f32 0.2548296, %v318_v12 }
 0x423   :  { %v339_v16 = vsel %vm335_vm3, %v333_v11, %v337_v13  ;;  %v322_v20 = vmul.f32 %v320_v14, %v303_v59 }
 0x424   :  { %v341_v19 = vadd.f32 1.0, %v339_v16 }
 0x425   :  { %v332_v23 = vmul.f32 %v834_v21, %v322_v20 }
 0x426   :  { %v1050_v22 = vmul.f32 %v341_v19, %v265_v18 }
 0x427   :  { %v334_v26 = vsub.f32 1.0, %v332_v23 }
 0x428   :  { %786 = vmatmul.msk.f32.vlgmr.msrb.gmra.mxu2 %vm109_vm0, %v1050_v22 }
 0x429   :  { %v338_v27 = vsub.f32 0.0, %v334_v26 }
 0x42b   :  { %v340_v28 = vsel %vm336_vm4, %v334_v26, %v338_v27 }
 0x42c   :  { %v342_v29 = vadd.f32 1.0, %v340_v28 }
 0x42e   :  { %v1056_v30 = vmul.f32 %v342_v29, %v266_v17 }
 0x430   :  { %787 = vmatmul.msk.f32.gmra.mxu2 %vm109_vm0, %v1056_v30 }
 0x44c   :  { %v501_v15 = vpop.xlane.xlu2 %500 }
 0x44d   :  { %v505_v31 = vmul.f32 %v501_v15, %v1014_v34 }
 0x44f   :  { %v507_v32 = vadd.f32 1e-05, %v505_v31 }
 0x451   :  { %835 = vrsqrt.f32 %v507_v32  ;;  %vm515_vm6 = vweird.f32 %v507_v32 }
 0x454   :  { %v504_v33 = vpop.xlane.xlu2 %503 }
 0x455   :  { %v506_v35 = vmul.f32 %v504_v33, %v1014_v34 }
 0x457   :  { %v836_v36 = vpop.eup %835  ;;  %v508_v37 = vadd.f32 1e-05, %v506_v35 }
 0x458   :  { %v510_v25 = vmul.f32 %v836_v36, %v507_v32  ;;  %vm516_vm5 = vweird.f32 %v836_v36 }
 0x459   :  { %837 = vrsqrt.f32 %v508_v37  ;;  %vm517_vm7 = vmor %vm515_vm6, %vm516_vm5  ;;  %vm525_vm9 = vweird.f32 %v508_v37  ;;  %vm669_vm6 = vcmask 523264  }
 0x45a   :  { %v511_v38 = vmul.f32 %v836_v36, %v510_v25 }
 0x45c   :  { %v512_v24 = vmul.f32 0.5, %v511_v38 }
 0x45e   :  { %v513_v39 = vsub.f32 1.5, %v512_v24 }
 0x45f   :  { %v838_v40 = vpop.eup %837 }
 0x460   :  { %v514_v41 = vmul.f32 %v836_v36, %v513_v39  ;;  %v520_v42 = vmul.f32 %v838_v40, %v508_v37  ;;  %vm526_vm8 = vweird.f32 %v838_v40 }
 0x461   :  { %vm527_vm10 = vmor %vm525_vm9, %vm526_vm8 }
 0x462   :  { %v518_v43 = vsel %vm517_vm7, %v836_v36, %v514_v41  ;;  %v521_v44 = vmul.f32 %v838_v40, %v520_v42 }
 0x463   :  { %v1063_v45 = vmul.f32 %v518_v43, %v1023_v51 }
 0x464   :  { %v522_v46 = vmul.f32 0.5, %v521_v44 }
 0x465   :  { %v1066_v34 = vmul.f32 0.70710677, %v1063_v45 }
 0x466   :  { %v523_v47 = vsub.f32 1.5, %v522_v46  ;;  %v531_v46 = vmul.f32 0.5, %v1063_v45  ;;  %v819_v45 = vld [vmem:[#allocation6 + $0xd8] ss:$0 sm:$0xff] }
 0x467   :  { %v535_v48 = vand.u32 2147483647, %v1066_v34  ;;  %vm601_vm4 = vcmp.ge.f32.partialorder %v1066_v34, 0.0 }
 0x468   :  { %v524_v49 = vmul.f32 %v838_v40, %v523_v47 }
 0x469   :  { %v537_v50 = vmul.f32 0.3275911, %v535_v48  ;;  %v589_v5 = vsub.f32 0.0, %v535_v48 }
 0x46a   :  { %v528_v52 = vsel %vm527_vm10, %v838_v40, %v524_v49 }
 0x46b   :  { %v539_v53 = vadd.f32 1.0, %v537_v50  ;;  %v1070_v54 = vmul.f32 %v528_v52, %v1030_v58  ;;  %v591_v11 = vmul.f32 %v589_v5, %v535_v48 }
 0x46d   :  { %839 = vrcp.f32 %v539_v53  ;;  %v1073_v51 = vmul.f32 0.70710677, %v1070_v54  ;;  %v552_v62 = vand.u32 2147483648, %v539_v53  ;;  %v550_v0 = vand.u32 2147483647, %v539_v53 }
 0x46e   :  { %vm546_vm12 = vweird.f32 %v539_v53  ;;  %v593_v20 = vmul.f32 1.442695, %v591_v11  ;;  %v532_v34 = vmul.f32 0.5, %v1070_v54 }
 0x46f   :  { %v536_v55 = vand.u32 2147483647, %v1073_v51  ;;  %v553_v58 = vor.u32 1.1754944e-38, %v552_v62  ;;  %vm551_vm14 = vcmp.eq.f32.partialorder %v550_v0, 8.507059e+37  ;;  %vm602_vm5 = vcmp.ge.f32.partialorder %v1073_v51, 0.0 }
 0x470   :  { %v820_v62 = vld [vmem:[#allocation6 + $0xe0] ss:$0 sm:$0xff] }
 0x471   :  { %v538_v56 = vmul.f32 0.3275911, %v536_v55  ;;  %v590_v27 = vsub.f32 0.0, %v536_v55 }
 0x473   :  { %v840_v57 = vpop.eup %839  ;;  %v540_v60 = vadd.f32 1.0, %v538_v56  ;;  %v592_v31 = vmul.f32 %v590_v27, %v536_v55 }
 0x474   :  { %v542_v59 = vmul.f32 %v840_v57, %v539_v53  ;;  %vm547_vm11 = vweird.f32 %v840_v57 }
 0x475   :  { %841 = vrcp.f32 %v540_v60  ;;  %vm548_vm13 = vmor %vm546_vm12, %vm547_vm11  ;;  %v567_v10 = vand.u32 2147483648, %v540_v60  ;;  %v565_v13 = vand.u32 2147483647, %v540_v60  ;;  %vm561_vm1 = vweird.f32 %v540_v60 }
 0x476   :  { %v543_v61 = vsub.f32 1.0, %v542_v59  ;;  %843 = vpow2.f32 %v593_v20  ;;  %v595_v37 = vmul.f32 1.442695, %v592_v31 }
 0x477   :  { %v568_v19 = vor.u32 1.1754944e-38, %v567_v10  ;;  %vm566_vm3 = vcmp.eq.f32.partialorder %v565_v13, 8.507059e+37 }
 0x478   :  { %v544_v63 = vmul.f32 %v840_v57, %v543_v61  ;;  %845 = vpow2.f32 %v595_v37 }
 0x47a   :  { %v545_v1 = vadd.f32 %v840_v57, %v544_v63 }
 0x47b   :  { %v842_v2 = vpop.eup %841 }
 0x47c   :  { %v549_v3 = vsel %vm548_vm13, %v840_v57, %v545_v1  ;;  %v557_v6 = vmul.f32 %v842_v2, %v540_v60  ;;  %vm562_vm15 = vweird.f32 %v842_v2  ;;  %v844_v25 = vpop.eup %843 }
 0x47d   :  { %v554_v4 = vsel %vm551_vm14, %v553_v58, %v549_v3  ;;  %vm563_vm2 = vmor %vm561_vm1, %vm562_vm15 }
 0x47e   :  { %v571_v7 = vmul.f32 1.0614054, %v554_v4  ;;  %v558_v8 = vsub.f32 1.0, %v557_v6  ;;  %v846_v49 = vpop.eup %845 }
 0x480   :  { %v573_v9 = vadd.f32 -1.4531521, %v571_v7  ;;  %v559_v12 = vmul.f32 %v842_v2, %v558_v8 }
 0x482   :  { %v575_v14 = vmul.f32 %v573_v9, %v554_v4  ;;  %v560_v16 = vadd.f32 %v842_v2, %v559_v12 }
 0x484   :  { %v577_v18 = vadd.f32 1.4214138, %v575_v14  ;;  %v564_v21 = vsel %vm563_vm2, %v842_v2, %v560_v16  ;;  %v682_v16 = vstv %s790_s8 }
 0x485   :  { %v569_v26 = vsel %vm566_vm3, %v568_v19, %v564_v21 }
 0x486   :  { %v579_v23 = vmul.f32 %v577_v18, %v554_v4  ;;  %v572_v28 = vmul.f32 1.0614054, %v569_v26 }
 0x488   :  { %v581_v17 = vadd.f32 -0.28449672, %v579_v23  ;;  %v574_v29 = vadd.f32 -1.4531521, %v572_v28 }
 0x48a   :  { %v583_v15 = vmul.f32 %v581_v17, %v554_v4  ;;  %v576_v32 = vmul.f32 %v574_v29, %v569_v26 }
 0x48c   :  { %v585_v33 = vadd.f32 0.2548296, %v583_v15  ;;  %v578_v35 = vadd.f32 1.4214138, %v576_v32 }
 0x48e   :  { %v587_v36 = vmul.f32 %v585_v33, %v554_v4  ;;  %v580_v38 = vmul.f32 %v578_v35, %v569_v26 }
 0x490   :  { %v597_v24 = vmul.f32 %v844_v25, %v587_v36  ;;  %v582_v39 = vadd.f32 -0.28449672, %v580_v38 }
 0x492   :  { %v599_v40 = vsub.f32 1.0, %v597_v24  ;;  %v584_v41 = vmul.f32 %v582_v39, %v569_v26 }
 0x494   :  { %v603_v42 = vsub.f32 0.0, %v599_v40  ;;  %v586_v43 = vadd.f32 0.2548296, %v584_v41 }
 0x496   :  { %v605_v44 = vsel %vm601_vm4, %v599_v40, %v603_v42  ;;  %v588_v48 = vmul.f32 %v586_v43, %v569_v26 }
 0x497   :  { %v607_v47 = vadd.f32 1.0, %v605_v44 }
 0x498   :  { %v598_v52 = vmul.f32 %v846_v49, %v588_v48 }
 0x499   :  { %v1078_v50 = vmul.f32 %v607_v47, %v531_v46 }
 0x49a   :  { %v600_v53 = vsub.f32 1.0, %v598_v52 }
 0x49b   :  { %788 = vmatmul.msk.f32.gmra.mxu2 %vm109_vm0, %v1078_v50 }
 0x49c   :  { %v604_v55 = vsub.f32 0.0, %v600_v53 }
 0x49e   :  { %v606_v56 = vsel %vm602_vm5, %v600_v53, %v604_v55 }
 0x49f   :  { %v608_v57 = vadd.f32 1.0, %v606_v56 }
 0x4a1   :  { %v1084_v59 = vmul.f32 %v608_v57, %v532_v34 }
 0x4a3   :  { %789 = vmatmul.msk.f32.gmra.mxu2 %vm109_vm0, %v1084_v59 }
 0x4ab   :  { %v646_v60 = vpop.f32.mrf.mxu2 }
 0x4ac   :  { %v647_v61 = vadd.f32 %v819_v45, %v646_v60 }
 0x4ae   :  { %847 = vtanh.f32 %v647_v61 }
 0x4b3   :  { %v649_v0 = vpop.f32.mrf.mxu2 }
 0x4b4   :  { %v848_v63 = vpop.eup %847  ;;  %v650_v1 = vadd.f32 %v819_v45, %v649_v0 }
 0x4b5   :  { %v665_v58 = vmul.f32 %v848_v63, %v820_v62 }
 0x4b6   :  { %849 = vtanh.f32 %v650_v1 }
 0x4b7   :  { %v670_v51 = vsel %vm669_vm6, %v665_v58, 0.0 }
 0x4b8   :  { %671 = vadd.xlane.f32.xlu2 %v670_v51 }
 0x4bc   :  { %v850_v54 = vpop.eup %849 }
 0x4bd   :  { %v666_v2 = vmul.f32 %v850_v54, %v820_v62 }
 0x4bf   :  { %v673_v3 = vsel %vm669_vm6, %v666_v2, 0.0 }
 0x4c0   :  { %674 = vadd.xlane.f32.xlu1 %v673_v3 }
 0x51e   :  { %v652_v4 = vpop.f32.mrf.mxu2 }
 0x51f   :  { %v653_v5 = vadd.f32 %v819_v45, %v652_v4 }
 0x521   :  { %851 = vtanh.f32 %v653_v5 }
 0x526   :  { %v655_v7 = vpop.f32.mrf.mxu2 }
 0x527   :  { %v852_v6 = vpop.eup %851  ;;  %v656_v8 = vadd.f32 %v819_v45, %v655_v7 }
 0x528   :  { %v667_v9 = vmul.f32 %v852_v6, %v820_v62 }
 0x529   :  { %853 = vtanh.f32 %v656_v8 }
 0x52a   :  { %v676_v10 = vsel %vm669_vm6, %v667_v9, 0.0 }
 0x52b   :  { %677 = vadd.xlane.f32.xlu2 %v676_v10  ;;  %v672_v14 = vpop.xlane.xlu2 %671 }
 0x52c   :  { %v683_v19 = vadd.f32 %v682_v16, %v672_v14 }
 0x52f   :  { %v854_v11 = vpop.eup %853 }
 0x530   :  { %v668_v12 = vmul.f32 %v854_v11, %v820_v62 }
 0x532   :  { %v679_v13 = vsel %vm669_vm6, %v668_v12, 0.0 }
 0x533   :  { %680 = vadd.xlane.f32.xlu0 %v679_v13  ;;  %v675_v27 = vpop.xlane.xlu1 %674 }
 0x534   :  { %v684_v15 = vadd.f32 %v682_v16, %v675_v27 }
 0x59e   :  { %v678_v18 = vpop.xlane.xlu2 %677 }
 0x59f   :  { %v685_v20 = vadd.f32 %v682_v16, %v678_v18 }
 0x5a1   :  { %v687_v21 = vmax.f32 %v683_v19, %v685_v20 }
 0x5a3   :  { %v689_v23 = vsub.f32 %v683_v19, %v687_v21  ;;  %v695_v26 = vsub.f32 %v685_v20, %v687_v21 }
 0x5a5   :  { %v691_v28 = vmul.f32 1.442695, %v689_v23  ;;  %v697_v17 = vmul.f32 1.442695, %v695_v26 }
 0x5a6   :  { %v681_v29 = vpop.xlane.xlu0 %680 }
 0x5a7   :  { %855 = vpow2.f32 %v691_v28  ;;  %v686_v31 = vadd.f32 %v682_v16, %v681_v29 }
 0x5a8   :  { %857 = vpow2.f32 %v697_v17 }
 0x5a9   :  { %v688_v32 = vmax.f32 %v684_v15, %v686_v31 }
 0x5ab   :  { %v690_v33 = vsub.f32 %v684_v15, %v688_v32  ;;  %v696_v35 = vsub.f32 %v686_v31, %v688_v32 }
 0x5ad   :  { %v856_v36 = vpop.eup %855  ;;  %v693_v25 = vmul.f32 1.442695, %v690_v33  ;;  %v699_v38 = vmul.f32 1.442695, %v696_v35 }
 0x5ae   :  { %v858_v37 = vpop.eup %857 }
 0x5af   :  { %v701_v24 = vadd.f32 %v858_v37, %v856_v36  ;;  %859 = vpow2.f32 %v693_v25 }
 0x5b1   :  { %861 = vrcp.f32 %v701_v24  ;;  %v714_v46 = vand.u32 2147483648, %v701_v24  ;;  %v712_v48 = vand.u32 2147483647, %v701_v24  ;;  %vm708_vm8 = vweird.f32 %v701_v24 }
 0x5b2   :  { %863 = vpow2.f32 %v699_v38 }
 0x5b3   :  { %v715_v52 = vor.u32 1.1754944e-38, %v714_v46  ;;  %vm713_vm10 = vcmp.eq.f32.partialorder %v712_v48, 8.507059e+37 }
 0x5b5   :  { %v860_v39 = vpop.eup %859 }
 0x5b7   :  { %v862_v40 = vpop.eup %861 }
 0x5b8   :  { %v864_v41 = vpop.eup %863  ;;  %v704_v42 = vmul.f32 %v862_v40, %v701_v24  ;;  %vm709_vm7 = vweird.f32 %v862_v40 }
 0x5b9   :  { %v702_v43 = vadd.f32 %v864_v41, %v860_v39  ;;  %vm710_vm9 = vmor %vm708_vm8, %vm709_vm7 }
 0x5ba   :  { %v705_v44 = vsub.f32 1.0, %v704_v42 }
 0x5bb   :  { %865 = vrcp.f32 %v702_v43  ;;  %v729_v63 = vand.u32 2147483648, %v702_v43  ;;  %v727_v1 = vand.u32 2147483647, %v702_v43  ;;  %vm723_vm12 = vweird.f32 %v702_v43 }
 0x5bc   :  { %v706_v47 = vmul.f32 %v862_v40, %v705_v44 }
 0x5bd   :  { %v730_v54 = vor.u32 1.1754944e-38, %v729_v63  ;;  %vm728_vm14 = vcmp.eq.f32.partialorder %v727_v1, 8.507059e+37 }
 0x5be   :  { %v707_v49 = vadd.f32 %v862_v40, %v706_v47 }
 0x5c0   :  { %v711_v53 = vsel %vm710_vm9, %v862_v40, %v707_v49 }
 0x5c1   :  { %v866_v55 = vpop.eup %865  ;;  %v716_v56 = vsel %vm713_vm10, %v715_v52, %v711_v53 }
 0x5c2   :  { %v719_v34 = vmul.f32 %v866_v55, %v702_v43  ;;  %v733_v57 = vmul.f32 %v856_v36, %v716_v56  ;;  %v737_v45 = vmul.f32 %v858_v37, %v716_v56  ;;  %vm724_vm11 = vweird.f32 %v866_v55 }
 0x5c3   :  { %vm725_vm13 = vmor %vm723_vm12, %vm724_vm11 }
 0x5c4   :  { %v720_v60 = vsub.f32 1.0, %v719_v34  ;;  %v735_v61 = vmul.f32 %v733_v57, %v1050_v22  ;;  %v739_v62 = vmul.f32 %v737_v45, %v1078_v50 }
 0x5c6   :  { %v721_v0 = vmul.f32 %v866_v55, %v720_v60  ;;  %v741_v58 = vadd.f32 %v739_v62, %v735_v61 }
 0x5c8   :  { %v722_v51 = vadd.f32 %v866_v55, %v721_v0  ;;  %743 = vst.msk [vmem:[#allocation9] sm:$0xff] %vm109_vm0, %v741_v58 }
 0x5ca   :  { %v726_v2 = vsel %vm725_vm13, %v866_v55, %v722_v51 }
 0x5cb   :  { %v731_v3 = vsel %vm728_vm14, %v730_v54, %v726_v2 }
 0x5cc   :  { %v734_v4 = vmul.f32 %v860_v39, %v731_v3  ;;  %v738_v5 = vmul.f32 %v864_v41, %v731_v3 }
 0x5ce   :  { %v736_v22 = vmul.f32 %v734_v4, %v1056_v30  ;;  %v740_v50 = vmul.f32 %v738_v5, %v1084_v59 }
 0x5d0   :  { %v742_v6 = vadd.f32 %v740_v50, %v736_v22 }
 0x5d2   :  { %744 = vst.msk [vmem:[#allocation9 + $0x8] sm:$0xff] %vm109_vm0, %v742_v6 }
 0x5d3   :  { %757 = dma.vmem_to_hbm [thread:$0]  %s750_s10, 256, %s752_s13, [#allocation4], %s961_s21, %s961_s21, %s962_s22  }
 0x5d4   :  { %957 = dma.done.wait [#allocation4], 256  }
 0x5d5   :  { %958 = vsyncadd [#allocation4], 4294967040 }
 0x5d6   :  { %762 = vsyncpa [#allocation3], 1 }
 0x5d7   :  { %763 = vsyncpa [#allocation8], 1 }
 0x5d8   :  { %764 = vsyncpa [#allocation4], 1 }
 0x5d9   :  { %765 = vsyncpa [#allocation5], 1 }

</bundles_post_ra>
